<compile_context>
chip_gen: v7x
topology: tpu7x:2x2x1
jax: 0.10.0
libtpu: 0.0.40
codegen_flags: <defaults>
</compile_context>

<pallas_src>
import jax
import jax.numpy as jnp
from jax import lax
from jax.experimental import pallas as pl
from jax.experimental.pallas import tpu as pltpu


def _round_up(x, m):
    return ((x + m - 1) // m) * m


def _round_down(x, m):
    return (x // m) * m


def _vmem_budget_bytes():
    """Per-generation scoped-VMEM budget (v5e/v6e: 96 MiB, v7x: ~48 MiB)."""
    try:
        cap = int(pltpu.get_tpu_info().vmem_capacity_bytes)
    except Exception:
        cap = 64 * 1024 * 1024           # conservative: v7x per-core VMEM
    return max(32 * 1024 * 1024, min((cap * 3) // 4, 96 * 1024 * 1024))


def _choose_spatial_tile(m_ext, batch, cin, cout, halo_ru, in_it, out_it,
                         w_bytes, budget):
    """Pick TM (lanes per grid step; a multiple of 256 = two 128-lane halves)."""

    def est_vmem(tm):
        tmh = tm // 2
        xbuf = 2 * cin * (tmh + halo_ru) * in_it       # two halo scratch buffers
        obuf = 2 * cout * tm * out_it                  # double-buffered out block
        return xbuf + obuf + w_bytes + (64 << 10)      # + slack for misc scratch

    target_in_bytes = 2 << 20                          # ~2 MiB of input per step
    tm = min(_round_up(m_ext, 256),
             max(256, _round_down(target_in_bytes // max(1, cin * in_it), 256)))
    # Shrink until the tile (plus pipeline buffers) fits comfortably in VMEM.
    while tm > 256 and est_vmem(tm) > budget // 2:
        tm = max(256, _round_down(tm // 2, 256))
    # Keep >=4 grid steps alive when possible so v7x can split work across cores.
    while tm > 256 and batch * ((m_ext + tm - 1) // tm) < 4:
        tm = max(256, _round_down(tm // 2, 256))
    return tm


def conv2d_block_forward(x_nchw, weight, bias, *, stride=1, padding=1,
                         compute_dtype=None):
    """Conv2dBlock.forward: ZeroPad2d(padding) -> Conv2d(bias) -> LeakyReLU(0.2).

    x_nchw : (B, Cin, H, W)    weight : (Cout, Cin, K, K)    bias : (Cout,)
    returns: (B, Cout, Ho, Wo) in NCHW, matching PyTorch.

    compute_dtype: optionally jnp.bfloat16 to halve HBM traffic / double MXU peak
    (f32 accumulation is kept).  Default None keeps the input dtype.
    """
    if stride != 1:
        # TODO(synk): stride > 1 needs strided tap windows (pl.ds with stride) in
        # the flattened-shift scheme; not implemented in the Pallas path.
        raise NotImplementedError("Pallas Conv2dBlock kernel supports stride=1 only")

    B, Cin, H, W = x_nchw.shape
    Cout, _, K, _ = weight.shape
    p = padding
    Hp, Wp = H + 2 * p, W + 2 * p
    Ho, Wo = Hp - K + 1, Wp - K + 1
    KK = K * K

    out_dtype = x_nchw.dtype
    in_dtype = jnp.dtype(compute_dtype) if compute_dtype is not None else jnp.dtype(x_nchw.dtype)
    in_it = jnp.dtype(in_dtype).itemsize
    out_it = jnp.dtype(out_dtype).itemsize

    # --- XLA glue: zero-pad once and flatten the padded spatial dims.  No K*K
    # duplication -- the kernel builds the taps itself from a single halo window.
    xp = jnp.pad(x_nchw, ((0, 0), (0, 0), (p, p), (p, p)))
    x_flat = xp.reshape(B, Cin, Hp * Wp).astype(in_dtype)

    # weight -> (K*K, Cout, Cin), tap index = kh*K + kw (matches the lane shifts).
    w_taps = jnp.transpose(weight, (2, 3, 0, 1)).reshape(KK, Cout, Cin).astype(in_dtype)
    b_col = bias.reshape(Cout, 1).astype(jnp.float32)

    # "Extended" output: Ho rows of padded width Wp.  Columns >= Wo of each row are
    # garbage (they read into the next padded row) and get cropped after the call;
    # this keeps every tap a contiguous lane shift and every store lane-dense.
    M_ext = Ho * Wp
    HALO = (K - 1) * Wp + (K - 1)            # max tap shift in flattened coords
    HALO_RU = _round_up(max(HALO, 1), 128)

    budget = _vmem_budget_bytes()
    w_bytes = KK * Cout * Cin * in_it
    TM = _choose_spatial_tile(M_ext, B, Cin, Cout, HALO_RU, in_it, out_it,
                              w_bytes, budget)
    TMh = TM // 2                             # two 128-aligned halves per step
    XW = TMh + HALO_RU                        # halo buffer width per half
    M_tiled = _round_up(M_ext, TM)
    n_tiles = M_tiled // TM

    # Pad the flat input so every halo DMA (up to m0 + TMh + XW) stays in bounds.
    Lpad = M_tiled + HALO_RU
    x_flat = jnp.pad(x_flat, ((0, 0), (0, 0), (0, Lpad - Hp * Wp)))

    def kernel(x_hbm, w_ref, b_ref, o_ref, xbuf, sem):
        bidx = pl.program_id(0)
        t = pl.program_id(1)
        m0 = pl.multiple_of(t * TM, 256)

        # Issue both halves' halo DMAs up front: half 1's DMA overlaps half 0's
        # compute.  Everything is started and waited inside this grid step, so the
        # pattern is safe with both grid axes "parallel".
        copies = []
        for h in range(2):
            cp = pltpu.make_async_copy(
                x_hbm.at[bidx, :, pl.ds(m0 + h * TMh, XW)],
                xbuf.at[h],
                sem.at[h])
            cp.start()
            copies.append(cp)

        w_all = [w_ref[i] for i in range(KK)]      # (Cout, Cin) per tap, resident
        bias_col = b_ref[...]                      # (Cout, 1), f32

        for h in range(2):
            copies[h].wait()
            acc = None
            for kh in range(K):
                for kw in range(K):
                    tap = kh * K + kw
                    shift = kh * Wp + kw           # static lane shift of the halo
                    x_tap = xbuf[h, :, pl.ds(shift, TMh)]          # (Cin, TMh)
                    d = jnp.dot(w_all[tap], x_tap,
                                preferred_element_type=jnp.float32)
                    acc = d if acc is None else acc + d
            y = acc + bias_col
            y = jnp.where(y >= 0, y, 0.2 * y)      # LeakyReLU(negative_slope=0.2)
            o_ref[:, pl.ds(h * TMh, TMh)] = y.astype(o_ref.dtype)

    cost = pl.CostEstimate(
        flops=2 * B * M_tiled * KK * Cin * Cout,
        transcendentals=0,
        bytes_accessed=int(x_flat.size) * in_it + int(w_taps.size) * in_it
                       + int(b_col.size) * 4 + B * Cout * M_tiled * out_it,
    )

    def run(single_buffer_consts):
        const_kw = {"pipeline_mode": pl.Buffered(1)} if single_buffer_consts else {}
        return pl.pallas_call(
            kernel,
            out_shape=jax.ShapeDtypeStruct((B, Cout, M_tiled), out_dtype),
            grid=(B, n_tiles),
            in_specs=[
                pl.BlockSpec(memory_space=pl.ANY),                        # flat input (HBM)
                pl.BlockSpec((KK, Cout, Cin), lambda b, t: (0, 0, 0), **const_kw),
                pl.BlockSpec((Cout, 1), lambda b, t: (0, 0), **const_kw),
            ],
            out_specs=pl.BlockSpec((None, Cout, TM), lambda b, t: (b, 0, t)),
            scratch_shapes=[
                pltpu.VMEM((2, Cin, XW), in_dtype),     # two halo buffers
                pltpu.SemaphoreType.DMA((2,)),
            ],
            compiler_params=pltpu.CompilerParams(
                dimension_semantics=("parallel", "parallel"),
                vmem_limit_bytes=budget,
            ),
            cost_estimate=cost,
        )(x_flat, w_taps, b_col)

    try:
        out = run(True)     # single-buffer the constant weight/bias blocks
    except Exception:
        out = run(False)    # fallback if this JAX build rejects pl.Buffered(1)

    # Crop the extended output: (B, Cout, M_tiled) -> valid Ho*Wp -> drop padded
    # columns -> NCHW.  Pure reshape + slice, no transpose epilogue.
    y = out[:, :, :M_ext].reshape(B, Cout, Ho, Wp)[:, :, :, :Wo]
    return y


def _reference(x_nchw, weight, bias, *, stride=1, padding=1):
    y = lax.conv_general_dilated(
        x_nchw, weight,
        window_strides=(stride, stride),
        padding=[(padding, padding), (padding, padding)],
        dimension_numbers=("NCHW", "OIHW", "NCHW"),
    )
    y = y + bias.reshape(1, -1, 1, 1)
    return jnp.where(y >= 0, y, 0.2 * y)


if __name__ == "__main__":
    # Conv2dBlock(input_dim=4, output_dim=8, kernel_size=3, stride=1, padding=1)
    B, Cin, H, W = 2, 4, 16, 16
    Cout, K, stride, padding = 8, 3, 1, 1

    key = jax.random.PRNGKey(0)
    kx, kw_, kb = jax.random.split(key, 3)
    x = jax.random.normal(kx, (B, Cin, H, W), dtype=jnp.float32)
    # deterministic synthetic parameters (shapes match nn.Conv2d(4, 8, 3))
    weight = jax.random.normal(kw_, (Cout, Cin, K, K), dtype=jnp.float32) * 0.1
    bias = jax.random.normal(kb, (Cout,), dtype=jnp.float32) * 0.1

    out = conv2d_block_forward(x, weight, bias, stride=stride, padding=padding)
    out = jax.block_until_ready(out)

    ref = _reference(x, weight, bias, stride=stride, padding=padding)
    assert out.shape == (B, Cout, H, W), out.shape
    assert jnp.allclose(out, ref, atol=1e-4, rtol=1e-4), (
        float(jnp.max(jnp.abs(out - ref)))
    )
    print("KERNEL_OK")
</pallas_src>

<mosaic_0001>
module attributes {stable_mosaic.version = 11 : i64} {
  func.func @kernel(%arg0: i32, %arg1: i32, %arg2: memref<2x4x640xf32, #tpu.memory_space<any>>, %arg3: memref<9x8x4xf32, #tpu.memory_space<vmem>>, %arg4: memref<8x1xf32, #tpu.memory_space<vmem>>, %arg5: memref<1x8x256xf32, #tpu.memory_space<vmem>>, %arg6: memref<2x4x256xf32, #tpu.memory_space<vmem>>, %arg7: memref<2x!tpu.dma_semaphore, #tpu.memory_space<semaphore_mem>>) attributes {dimension_semantics = [#tpu.dimension_semantics<parallel>, #tpu.dimension_semantics<parallel>], iteration_bounds = array<i64: 2, 2>, scalar_prefetch = 0 : i64, scratch_operands = 2 : i64, tpu.core_type = #tpu.core_type<tc>, window_params = [{}, {pipeline_mode = #tpu.pipeline_mode<synchronous>, transform_indices = @transform_1, window_bounds = array<i64: 9, 8, 4>}, {pipeline_mode = #tpu.pipeline_mode<synchronous>, transform_indices = @transform_2, window_bounds = array<i64: 8, 1>}, {transform_indices = @transform_3, window_bounds = array<i64: 1, 8, 256>}]} {
    %c256_i32 = arith.constant 256 : i32
    %0 = arith.muli %arg1, %c256_i32 : i32
    %1 = tpu.assume_multiple %0, 256 : i32
    %c0_i32 = arith.constant 0 : i32
    %2 = arith.addi %1, %c0_i32 : i32
    %c0_i32_0 = arith.constant 0 : i32
    %c0_i32_1 = arith.constant 0 : i32
    %c0_i32_2 = arith.constant 0 : i32
    %3 = tpu.memref_slice %arg2[%arg0, %c0_i32_2, %2] : memref<2x4x640xf32, #tpu.memory_space<any>> -> memref<1x4x256xf32, #tpu.memory_space<any>>
    %4 = tpu.memref_squeeze %3 : memref<1x4x256xf32, #tpu.memory_space<any>> -> memref<4x256xf32, #tpu.memory_space<any>>
    %c0_i32_3 = arith.constant 0 : i32
    %c0_i32_4 = arith.constant 0 : i32
    %5 = tpu.memref_slice %arg6[%c0_i32_0, %c0_i32_3, %c0_i32_4] : memref<2x4x256xf32, #tpu.memory_space<vmem>> -> memref<1x4x256xf32, #tpu.memory_space<vmem>>
    %6 = tpu.memref_squeeze %5 : memref<1x4x256xf32, #tpu.memory_space<vmem>> -> memref<4x256xf32, #tpu.memory_space<vmem>>
    %7 = tpu.memref_slice %arg7[%c0_i32_1] : memref<2x!tpu.dma_semaphore, #tpu.memory_space<semaphore_mem>> -> memref<1x!tpu.dma_semaphore, #tpu.memory_space<semaphore_mem>>
    %8 = tpu.memref_squeeze %7 : memref<1x!tpu.dma_semaphore, #tpu.memory_space<semaphore_mem>> -> memref<!tpu.dma_semaphore, #tpu.memory_space<semaphore_mem>>
    tpu.enqueue_dma source(%4 : memref<4x256xf32, #tpu.memory_space<any>>) target(%6 : memref<4x256xf32, #tpu.memory_space<vmem>>) target_semaphore(%8 : memref<!tpu.dma_semaphore, #tpu.memory_space<semaphore_mem>>)
    %c128_i32 = arith.constant 128 : i32
    %9 = arith.addi %1, %c128_i32 : i32
    %c1_i32 = arith.constant 1 : i32
    %c1_i32_5 = arith.constant 1 : i32
    %c0_i32_6 = arith.constant 0 : i32
    %10 = tpu.memref_slice %arg2[%arg0, %c0_i32_6, %9] : memref<2x4x640xf32, #tpu.memory_space<any>> -> memref<1x4x256xf32, #tpu.memory_space<any>>
    %11 = tpu.memref_squeeze %10 : memref<1x4x256xf32, #tpu.memory_space<any>> -> memref<4x256xf32, #tpu.memory_space<any>>
    %c0_i32_7 = arith.constant 0 : i32
    %c0_i32_8 = arith.constant 0 : i32
    %12 = tpu.memref_slice %arg6[%c1_i32, %c0_i32_7, %c0_i32_8] : memref<2x4x256xf32, #tpu.memory_space<vmem>> -> memref<1x4x256xf32, #tpu.memory_space<vmem>>
    %13 = tpu.memref_squeeze %12 : memref<1x4x256xf32, #tpu.memory_space<vmem>> -> memref<4x256xf32, #tpu.memory_space<vmem>>
    %14 = tpu.memref_slice %arg7[%c1_i32_5] : memref<2x!tpu.dma_semaphore, #tpu.memory_space<semaphore_mem>> -> memref<1x!tpu.dma_semaphore, #tpu.memory_space<semaphore_mem>>
    %15 = tpu.memref_squeeze %14 : memref<1x!tpu.dma_semaphore, #tpu.memory_space<semaphore_mem>> -> memref<!tpu.dma_semaphore, #tpu.memory_space<semaphore_mem>>
    tpu.enqueue_dma source(%11 : memref<4x256xf32, #tpu.memory_space<any>>) target(%13 : memref<4x256xf32, #tpu.memory_space<vmem>>) target_semaphore(%15 : memref<!tpu.dma_semaphore, #tpu.memory_space<semaphore_mem>>)
    %c0 = arith.constant 0 : index
    %c0_9 = arith.constant 0 : index
    %c0_10 = arith.constant 0 : index
    %16 = vector.load %arg3[%c0, %c0_9, %c0_10] : memref<9x8x4xf32, #tpu.memory_space<vmem>>, vector<1x8x4xf32>
    %17 = vector.shape_cast %16 : vector<1x8x4xf32> to vector<8x4xf32>
    %c1 = arith.constant 1 : index
    %c0_11 = arith.constant 0 : index
    %c0_12 = arith.constant 0 : index
    %18 = vector.load %arg3[%c1, %c0_11, %c0_12] : memref<9x8x4xf32, #tpu.memory_space<vmem>>, vector<1x8x4xf32>
    %19 = vector.shape_cast %18 : vector<1x8x4xf32> to vector<8x4xf32>
    %c2 = arith.constant 2 : index
    %c0_13 = arith.constant 0 : index
    %c0_14 = arith.constant 0 : index
    %20 = vector.load %arg3[%c2, %c0_13, %c0_14] : memref<9x8x4xf32, #tpu.memory_space<vmem>>, vector<1x8x4xf32>
    %21 = vector.shape_cast %20 : vector<1x8x4xf32> to vector<8x4xf32>
    %c3 = arith.constant 3 : index
    %c0_15 = arith.constant 0 : index
    %c0_16 = arith.constant 0 : index
    %22 = vector.load %arg3[%c3, %c0_15, %c0_16] : memref<9x8x4xf32, #tpu.memory_space<vmem>>, vector<1x8x4xf32>
    %23 = vector.shape_cast %22 : vector<1x8x4xf32> to vector<8x4xf32>
    %c4 = arith.constant 4 : index
    %c0_17 = arith.constant 0 : index
    %c0_18 = arith.constant 0 : index
    %24 = vector.load %arg3[%c4, %c0_17, %c0_18] : memref<9x8x4xf32, #tpu.memory_space<vmem>>, vector<1x8x4xf32>
    %25 = vector.shape_cast %24 : vector<1x8x4xf32> to vector<8x4xf32>
    %c5 = arith.constant 5 : index
    %c0_19 = arith.constant 0 : index
    %c0_20 = arith.constant 0 : index
    %26 = vector.load %arg3[%c5, %c0_19, %c0_20] : memref<9x8x4xf32, #tpu.memory_space<vmem>>, vector<1x8x4xf32>
    %27 = vector.shape_cast %26 : vector<1x8x4xf32> to vector<8x4xf32>
    %c6 = arith.constant 6 : index
    %c0_21 = arith.constant 0 : index
    %c0_22 = arith.constant 0 : index
    %28 = vector.load %arg3[%c6, %c0_21, %c0_22] : memref<9x8x4xf32, #tpu.memory_space<vmem>>, vector<1x8x4xf32>
    %29 = vector.shape_cast %28 : vector<1x8x4xf32> to vector<8x4xf32>
    %c7 = arith.constant 7 : index
    %c0_23 = arith.constant 0 : index
    %c0_24 = arith.constant 0 : index
    %30 = vector.load %arg3[%c7, %c0_23, %c0_24] : memref<9x8x4xf32, #tpu.memory_space<vmem>>, vector<1x8x4xf32>
    %31 = vector.shape_cast %30 : vector<1x8x4xf32> to vector<8x4xf32>
    %c8 = arith.constant 8 : index
    %c0_25 = arith.constant 0 : index
    %c0_26 = arith.constant 0 : index
    %32 = vector.load %arg3[%c8, %c0_25, %c0_26] : memref<9x8x4xf32, #tpu.memory_space<vmem>>, vector<1x8x4xf32>
    %33 = vector.shape_cast %32 : vector<1x8x4xf32> to vector<8x4xf32>
    %c0_27 = arith.constant 0 : index
    %c0_28 = arith.constant 0 : index
    %34 = vector.load %arg4[%c0_27, %c0_28] : memref<8x1xf32, #tpu.memory_space<vmem>>, vector<8x1xf32>
    %c0_i32_29 = arith.constant 0 : i32
    %c0_i32_30 = arith.constant 0 : i32
    %c0_i32_31 = arith.constant 0 : i32
    %35 = tpu.memref_slice %arg2[%arg0, %c0_i32_31, %2] : memref<2x4x640xf32, #tpu.memory_space<any>> -> memref<1x4x256xf32, #tpu.memory_space<any>>
    %36 = tpu.memref_squeeze %35 : memref<1x4x256xf32, #tpu.memory_space<any>> -> memref<4x256xf32, #tpu.memory_space<any>>
    %c0_i32_32 = arith.constant 0 : i32
    %c0_i32_33 = arith.constant 0 : i32
    %37 = tpu.memref_slice %arg6[%c0_i32_29, %c0_i32_32, %c0_i32_33] : memref<2x4x256xf32, #tpu.memory_space<vmem>> -> memref<1x4x256xf32, #tpu.memory_space<vmem>>
    %38 = tpu.memref_squeeze %37 : memref<1x4x256xf32, #tpu.memory_space<vmem>> -> memref<4x256xf32, #tpu.memory_space<vmem>>
    %39 = tpu.memref_slice %arg7[%c0_i32_30] : memref<2x!tpu.dma_semaphore, #tpu.memory_space<semaphore_mem>> -> memref<1x!tpu.dma_semaphore, #tpu.memory_space<semaphore_mem>>
    %40 = tpu.memref_squeeze %39 : memref<1x!tpu.dma_semaphore, #tpu.memory_space<semaphore_mem>> -> memref<!tpu.dma_semaphore, #tpu.memory_space<semaphore_mem>>
    tpu.wait_dma2 semaphore(%40 : memref<!tpu.dma_semaphore, #tpu.memory_space<semaphore_mem>>) src(%36 : memref<4x256xf32, #tpu.memory_space<any>>) dst(%38 : memref<4x256xf32, #tpu.memory_space<vmem>>)
    %c0_34 = arith.constant 0 : index
    %c0_35 = arith.constant 0 : index
    %c0_36 = arith.constant 0 : index
    %41 = vector.load %arg6[%c0_34, %c0_35, %c0_36] : memref<2x4x256xf32, #tpu.memory_space<vmem>>, vector<1x4x128xf32>
    %42 = vector.shape_cast %41 : vector<1x4x128xf32> to vector<4x128xf32>
    %cst = arith.constant dense<0.000000e+00> : vector<8x128xf32>
    %43 = tpu.matmul %17, %42, %cst {dimension_numbers = #tpu.dot_dimension_numbers<[1], [0], [0], [1], [0, 0, 1, 1], [], []>} : vector<8x4xf32>, vector<4x128xf32>, vector<8x128xf32> -> vector<8x128xf32>
    %c0_37 = arith.constant 0 : index
    %c0_38 = arith.constant 0 : index
    %c1_39 = arith.constant 1 : index
    %44 = vector.load %arg6[%c0_37, %c0_38, %c1_39] : memref<2x4x256xf32, #tpu.memory_space<vmem>>, vector<1x4x128xf32>
    %45 = vector.shape_cast %44 : vector<1x4x128xf32> to vector<4x128xf32>
    %cst_40 = arith.constant dense<0.000000e+00> : vector<8x128xf32>
    %46 = tpu.matmul %19, %45, %cst_40 {dimension_numbers = #tpu.dot_dimension_numbers<[1], [0], [0], [1], [0, 0, 1, 1], [], []>} : vector<8x4xf32>, vector<4x128xf32>, vector<8x128xf32> -> vector<8x128xf32>
    %47 = arith.addf %43, %46 : vector<8x128xf32>
    %c0_41 = arith.constant 0 : index
    %c0_42 = arith.constant 0 : index
    %c2_43 = arith.constant 2 : index
    %48 = vector.load %arg6[%c0_41, %c0_42, %c2_43] : memref<2x4x256xf32, #tpu.memory_space<vmem>>, vector<1x4x128xf32>
    %49 = vector.shape_cast %48 : vector<1x4x128xf32> to vector<4x128xf32>
    %cst_44 = arith.constant dense<0.000000e+00> : vector<8x128xf32>
    %50 = tpu.matmul %21, %49, %cst_44 {dimension_numbers = #tpu.dot_dimension_numbers<[1], [0], [0], [1], [0, 0, 1, 1], [], []>} : vector<8x4xf32>, vector<4x128xf32>, vector<8x128xf32> -> vector<8x128xf32>
    %51 = arith.addf %47, %50 : vector<8x128xf32>
    %c0_45 = arith.constant 0 : index
    %c0_46 = arith.constant 0 : index
    %c18 = arith.constant 18 : index
    %52 = vector.load %arg6[%c0_45, %c0_46, %c18] : memref<2x4x256xf32, #tpu.memory_space<vmem>>, vector<1x4x128xf32>
    %53 = vector.shape_cast %52 : vector<1x4x128xf32> to vector<4x128xf32>
    %cst_47 = arith.constant dense<0.000000e+00> : vector<8x128xf32>
    %54 = tpu.matmul %23, %53, %cst_47 {dimension_numbers = #tpu.dot_dimension_numbers<[1], [0], [0], [1], [0, 0, 1, 1], [], []>} : vector<8x4xf32>, vector<4x128xf32>, vector<8x128xf32> -> vector<8x128xf32>
    %55 = arith.addf %51, %54 : vector<8x128xf32>
    %c0_48 = arith.constant 0 : index
    %c0_49 = arith.constant 0 : index
    %c19 = arith.constant 19 : index
    %56 = vector.load %arg6[%c0_48, %c0_49, %c19] : memref<2x4x256xf32, #tpu.memory_space<vmem>>, vector<1x4x128xf32>
    %57 = vector.shape_cast %56 : vector<1x4x128xf32> to vector<4x128xf32>
    %cst_50 = arith.constant dense<0.000000e+00> : vector<8x128xf32>
    %58 = tpu.matmul %25, %57, %cst_50 {dimension_numbers = #tpu.dot_dimension_numbers<[1], [0], [0], [1], [0, 0, 1, 1], [], []>} : vector<8x4xf32>, vector<4x128xf32>, vector<8x128xf32> -> vector<8x128xf32>
    %59 = arith.addf %55, %58 : vector<8x128xf32>
    %c0_51 = arith.constant 0 : index
    %c0_52 = arith.constant 0 : index
    %c20 = arith.constant 20 : index
    %60 = vector.load %arg6[%c0_51, %c0_52, %c20] : memref<2x4x256xf32, #tpu.memory_space<vmem>>, vector<1x4x128xf32>
    %61 = vector.shape_cast %60 : vector<1x4x128xf32> to vector<4x128xf32>
    %cst_53 = arith.constant dense<0.000000e+00> : vector<8x128xf32>
    %62 = tpu.matmul %27, %61, %cst_53 {dimension_numbers = #tpu.dot_dimension_numbers<[1], [0], [0], [1], [0, 0, 1, 1], [], []>} : vector<8x4xf32>, vector<4x128xf32>, vector<8x128xf32> -> vector<8x128xf32>
    %63 = arith.addf %59, %62 : vector<8x128xf32>
    %c0_54 = arith.constant 0 : index
    %c0_55 = arith.constant 0 : index
    %c36 = arith.constant 36 : index
    %64 = vector.load %arg6[%c0_54, %c0_55, %c36] : memref<2x4x256xf32, #tpu.memory_space<vmem>>, vector<1x4x128xf32>
    %65 = vector.shape_cast %64 : vector<1x4x128xf32> to vector<4x128xf32>
    %cst_56 = arith.constant dense<0.000000e+00> : vector<8x128xf32>
    %66 = tpu.matmul %29, %65, %cst_56 {dimension_numbers = #tpu.dot_dimension_numbers<[1], [0], [0], [1], [0, 0, 1, 1], [], []>} : vector<8x4xf32>, vector<4x128xf32>, vector<8x128xf32> -> vector<8x128xf32>
    %67 = arith.addf %63, %66 : vector<8x128xf32>
    %c0_57 = arith.constant 0 : index
    %c0_58 = arith.constant 0 : index
    %c37 = arith.constant 37 : index
    %68 = vector.load %arg6[%c0_57, %c0_58, %c37] : memref<2x4x256xf32, #tpu.memory_space<vmem>>, vector<1x4x128xf32>
    %69 = vector.shape_cast %68 : vector<1x4x128xf32> to vector<4x128xf32>
    %cst_59 = arith.constant dense<0.000000e+00> : vector<8x128xf32>
    %70 = tpu.matmul %31, %69, %cst_59 {dimension_numbers = #tpu.dot_dimension_numbers<[1], [0], [0], [1], [0, 0, 1, 1], [], []>} : vector<8x4xf32>, vector<4x128xf32>, vector<8x128xf32> -> vector<8x128xf32>
    %71 = arith.addf %67, %70 : vector<8x128xf32>
    %c0_60 = arith.constant 0 : index
    %c0_61 = arith.constant 0 : index
    %c38 = arith.constant 38 : index
    %72 = vector.load %arg6[%c0_60, %c0_61, %c38] : memref<2x4x256xf32, #tpu.memory_space<vmem>>, vector<1x4x128xf32>
    %73 = vector.shape_cast %72 : vector<1x4x128xf32> to vector<4x128xf32>
    %cst_62 = arith.constant dense<0.000000e+00> : vector<8x128xf32>
    %74 = tpu.matmul %33, %73, %cst_62 {dimension_numbers = #tpu.dot_dimension_numbers<[1], [0], [0], [1], [0, 0, 1, 1], [], []>} : vector<8x4xf32>, vector<4x128xf32>, vector<8x128xf32> -> vector<8x128xf32>
    %75 = arith.addf %71, %74 : vector<8x128xf32>
    %76 = vector.broadcast %34 : vector<8x1xf32> to vector<8x128xf32>
    %77 = arith.addf %75, %76 : vector<8x128xf32>
    %cst_63 = arith.constant 0.000000e+00 : f32
    %78 = vector.broadcast %cst_63 : f32 to vector<8x128xf32>
    %79 = arith.cmpf oge, %77, %78 : vector<8x128xf32>
    %cst_64 = arith.constant 2.000000e-01 : f32
    %80 = vector.broadcast %cst_64 : f32 to vector<8x128xf32>
    %81 = arith.mulf %80, %77 : vector<8x128xf32>
    %82 = arith.select %79, %77, %81 : vector<8x128xi1>, vector<8x128xf32>
    %c0_65 = arith.constant 0 : index
    %c0_66 = arith.constant 0 : index
    %c0_67 = arith.constant 0 : index
    %83 = vector.load %arg5[%c0_65, %c0_66, %c0_67] : memref<1x8x256xf32, #tpu.memory_space<vmem>>, vector<1x8x128xf32>
    %84 = vector.shape_cast %83 : vector<1x8x128xf32> to vector<8x128xf32>
    %85 = vector.shape_cast %82 : vector<8x128xf32> to vector<1x8x128xf32>
    tpu.vector_store %arg5[%c0_65, %c0_66, %c0_67], %85 {strides = array<i32>} : memref<1x8x256xf32, #tpu.memory_space<vmem>>, vector<1x8x128xf32>,
    %c1_i32_68 = arith.constant 1 : i32
    %c1_i32_69 = arith.constant 1 : i32
    %c0_i32_70 = arith.constant 0 : i32
    %86 = tpu.memref_slice %arg2[%arg0, %c0_i32_70, %9] : memref<2x4x640xf32, #tpu.memory_space<any>> -> memref<1x4x256xf32, #tpu.memory_space<any>>
    %87 = tpu.memref_squeeze %86 : memref<1x4x256xf32, #tpu.memory_space<any>> -> memref<4x256xf32, #tpu.memory_space<any>>
    %c0_i32_71 = arith.constant 0 : i32
    %c0_i32_72 = arith.constant 0 : i32
    %88 = tpu.memref_slice %arg6[%c1_i32_68, %c0_i32_71, %c0_i32_72] : memref<2x4x256xf32, #tpu.memory_space<vmem>> -> memref<1x4x256xf32, #tpu.memory_space<vmem>>
    %89 = tpu.memref_squeeze %88 : memref<1x4x256xf32, #tpu.memory_space<vmem>> -> memref<4x256xf32, #tpu.memory_space<vmem>>
    %90 = tpu.memref_slice %arg7[%c1_i32_69] : memref<2x!tpu.dma_semaphore, #tpu.memory_space<semaphore_mem>> -> memref<1x!tpu.dma_semaphore, #tpu.memory_space<semaphore_mem>>
    %91 = tpu.memref_squeeze %90 : memref<1x!tpu.dma_semaphore, #tpu.memory_space<semaphore_mem>> -> memref<!tpu.dma_semaphore, #tpu.memory_space<semaphore_mem>>
    tpu.wait_dma2 semaphore(%91 : memref<!tpu.dma_semaphore, #tpu.memory_space<semaphore_mem>>) src(%87 : memref<4x256xf32, #tpu.memory_space<any>>) dst(%89 : memref<4x256xf32, #tpu.memory_space<vmem>>)
    %c1_73 = arith.constant 1 : index
    %c0_74 = arith.constant 0 : index
    %c0_75 = arith.constant 0 : index
    %92 = vector.load %arg6[%c1_73, %c0_74, %c0_75] : memref<2x4x256xf32, #tpu.memory_space<vmem>>, vector<1x4x128xf32>
    %93 = vector.shape_cast %92 : vector<1x4x128xf32> to vector<4x128xf32>
    %cst_76 = arith.constant dense<0.000000e+00> : vector<8x128xf32>
    %94 = tpu.matmul %17, %93, %cst_76 {dimension_numbers = #tpu.dot_dimension_numbers<[1], [0], [0], [1], [0, 0, 1, 1], [], []>} : vector<8x4xf32>, vector<4x128xf32>, vector<8x128xf32> -> vector<8x128xf32>
    %c1_77 = arith.constant 1 : index
    %c0_78 = arith.constant 0 : index
    %c1_79 = arith.constant 1 : index
    %95 = vector.load %arg6[%c1_77, %c0_78, %c1_79] : memref<2x4x256xf32, #tpu.memory_space<vmem>>, vector<1x4x128xf32>
    %96 = vector.shape_cast %95 : vector<1x4x128xf32> to vector<4x128xf32>
    %cst_80 = arith.constant dense<0.000000e+00> : vector<8x128xf32>
    %97 = tpu.matmul %19, %96, %cst_80 {dimension_numbers = #tpu.dot_dimension_numbers<[1], [0], [0], [1], [0, 0, 1, 1], [], []>} : vector<8x4xf32>, vector<4x128xf32>, vector<8x128xf32> -> vector<8x128xf32>
    %98 = arith.addf %94, %97 : vector<8x128xf32>
    %c1_81 = arith.constant 1 : index
    %c0_82 = arith.constant 0 : index
    %c2_83 = arith.constant 2 : index
    %99 = vector.load %arg6[%c1_81, %c0_82, %c2_83] : memref<2x4x256xf32, #tpu.memory_space<vmem>>, vector<1x4x128xf32>
    %100 = vector.shape_cast %99 : vector<1x4x128xf32> to vector<4x128xf32>
    %cst_84 = arith.constant dense<0.000000e+00> : vector<8x128xf32>
    %101 = tpu.matmul %21, %100, %cst_84 {dimension_numbers = #tpu.dot_dimension_numbers<[1], [0], [0], [1], [0, 0, 1, 1], [], []>} : vector<8x4xf32>, vector<4x128xf32>, vector<8x128xf32> -> vector<8x128xf32>
    %102 = arith.addf %98, %101 : vector<8x128xf32>
    %c1_85 = arith.constant 1 : index
    %c0_86 = arith.constant 0 : index
    %c18_87 = arith.constant 18 : index
    %103 = vector.load %arg6[%c1_85, %c0_86, %c18_87] : memref<2x4x256xf32, #tpu.memory_space<vmem>>, vector<1x4x128xf32>
    %104 = vector.shape_cast %103 : vector<1x4x128xf32> to vector<4x128xf32>
    %cst_88 = arith.constant dense<0.000000e+00> : vector<8x128xf32>
    %105 = tpu.matmul %23, %104, %cst_88 {dimension_numbers = #tpu.dot_dimension_numbers<[1], [0], [0], [1], [0, 0, 1, 1], [], []>} : vector<8x4xf32>, vector<4x128xf32>, vector<8x128xf32> -> vector<8x128xf32>
    %106 = arith.addf %102, %105 : vector<8x128xf32>
    %c1_89 = arith.constant 1 : index
    %c0_90 = arith.constant 0 : index
    %c19_91 = arith.constant 19 : index
    %107 = vector.load %arg6[%c1_89, %c0_90, %c19_91] : memref<2x4x256xf32, #tpu.memory_space<vmem>>, vector<1x4x128xf32>
    %108 = vector.shape_cast %107 : vector<1x4x128xf32> to vector<4x128xf32>
    %cst_92 = arith.constant dense<0.000000e+00> : vector<8x128xf32>
    %109 = tpu.matmul %25, %108, %cst_92 {dimension_numbers = #tpu.dot_dimension_numbers<[1], [0], [0], [1], [0, 0, 1, 1], [], []>} : vector<8x4xf32>, vector<4x128xf32>, vector<8x128xf32> -> vector<8x128xf32>
    %110 = arith.addf %106, %109 : vector<8x128xf32>
    %c1_93 = arith.constant 1 : index
    %c0_94 = arith.constant 0 : index
    %c20_95 = arith.constant 20 : index
    %111 = vector.load %arg6[%c1_93, %c0_94, %c20_95] : memref<2x4x256xf32, #tpu.memory_space<vmem>>, vector<1x4x128xf32>
    %112 = vector.shape_cast %111 : vector<1x4x128xf32> to vector<4x128xf32>
    %cst_96 = arith.constant dense<0.000000e+00> : vector<8x128xf32>
    %113 = tpu.matmul %27, %112, %cst_96 {dimension_numbers = #tpu.dot_dimension_numbers<[1], [0], [0], [1], [0, 0, 1, 1], [], []>} : vector<8x4xf32>, vector<4x128xf32>, vector<8x128xf32> -> vector<8x128xf32>
    %114 = arith.addf %110, %113 : vector<8x128xf32>
    %c1_97 = arith.constant 1 : index
    %c0_98 = arith.constant 0 : index
    %c36_99 = arith.constant 36 : index
    %115 = vector.load %arg6[%c1_97, %c0_98, %c36_99] : memref<2x4x256xf32, #tpu.memory_space<vmem>>, vector<1x4x128xf32>
    %116 = vector.shape_cast %115 : vector<1x4x128xf32> to vector<4x128xf32>
    %cst_100 = arith.constant dense<0.000000e+00> : vector<8x128xf32>
    %117 = tpu.matmul %29, %116, %cst_100 {dimension_numbers = #tpu.dot_dimension_numbers<[1], [0], [0], [1], [0, 0, 1, 1], [], []>} : vector<8x4xf32>, vector<4x128xf32>, vector<8x128xf32> -> vector<8x128xf32>
    %118 = arith.addf %114, %117 : vector<8x128xf32>
    %c1_101 = arith.constant 1 : index
    %c0_102 = arith.constant 0 : index
    %c37_103 = arith.constant 37 : index
    %119 = vector.load %arg6[%c1_101, %c0_102, %c37_103] : memref<2x4x256xf32, #tpu.memory_space<vmem>>, vector<1x4x128xf32>
    %120 = vector.shape_cast %119 : vector<1x4x128xf32> to vector<4x128xf32>
    %cst_104 = arith.constant dense<0.000000e+00> : vector<8x128xf32>
    %121 = tpu.matmul %31, %120, %cst_104 {dimension_numbers = #tpu.dot_dimension_numbers<[1], [0], [0], [1], [0, 0, 1, 1], [], []>} : vector<8x4xf32>, vector<4x128xf32>, vector<8x128xf32> -> vector<8x128xf32>
    %122 = arith.addf %118, %121 : vector<8x128xf32>
    %c1_105 = arith.constant 1 : index
    %c0_106 = arith.constant 0 : index
    %c38_107 = arith.constant 38 : index
    %123 = vector.load %arg6[%c1_105, %c0_106, %c38_107] : memref<2x4x256xf32, #tpu.memory_space<vmem>>, vector<1x4x128xf32>
    %124 = vector.shape_cast %123 : vector<1x4x128xf32> to vector<4x128xf32>
    %cst_108 = arith.constant dense<0.000000e+00> : vector<8x128xf32>
    %125 = tpu.matmul %33, %124, %cst_108 {dimension_numbers = #tpu.dot_dimension_numbers<[1], [0], [0], [1], [0, 0, 1, 1], [], []>} : vector<8x4xf32>, vector<4x128xf32>, vector<8x128xf32> -> vector<8x128xf32>
    %126 = arith.addf %122, %125 : vector<8x128xf32>
    %127 = vector.broadcast %34 : vector<8x1xf32> to vector<8x128xf32>
    %128 = arith.addf %126, %127 : vector<8x128xf32>
    %cst_109 = arith.constant 0.000000e+00 : f32
    %129 = vector.broadcast %cst_109 : f32 to vector<8x128xf32>
    %130 = arith.cmpf oge, %128, %129 : vector<8x128xf32>
    %cst_110 = arith.constant 2.000000e-01 : f32
    %131 = vector.broadcast %cst_110 : f32 to vector<8x128xf32>
    %132 = arith.mulf %131, %128 : vector<8x128xf32>
    %133 = arith.select %130, %128, %132 : vector<8x128xi1>, vector<8x128xf32>
    %c0_111 = arith.constant 0 : index
    %c0_112 = arith.constant 0 : index
    %c128 = arith.constant 128 : index
    %134 = vector.load %arg5[%c0_111, %c0_112, %c128] : memref<1x8x256xf32, #tpu.memory_space<vmem>>, vector<1x8x128xf32>
    %135 = vector.shape_cast %134 : vector<1x8x128xf32> to vector<8x128xf32>
    %136 = vector.shape_cast %133 : vector<8x128xf32> to vector<1x8x128xf32>
    tpu.vector_store %arg5[%c0_111, %c0_112, %c128], %136 {strides = array<i32>} : memref<1x8x256xf32, #tpu.memory_space<vmem>>, vector<1x8x128xf32>,
    return
  }
  func.func @transform_1(%arg0: i32, %arg1: i32) -> (i32, i32, i32) {
    %c0_i32 = arith.constant 0 : i32
    %c0_i32_0 = arith.constant 0 : i32
    %c0_i32_1 = arith.constant 0 : i32
    %c0_i32_2 = arith.constant 0 : i32
    return %c0_i32, %c0_i32_0, %c0_i32_1 : i32, i32, i32
  }
  func.func @transform_2(%arg0: i32, %arg1: i32) -> (i32, i32) {
    %c0_i32 = arith.constant 0 : i32
    %c0_i32_0 = arith.constant 0 : i32
    %c0_i32_1 = arith.constant 0 : i32
    return %c0_i32, %c0_i32_0 : i32, i32
  }
  func.func @transform_3(%arg0: i32, %arg1: i32) -> (i32, i32, i32) {
    %c0_i32 = arith.constant 0 : i32
    %c0_i32_0 = arith.constant 0 : i32
    return %arg0, %c0_i32, %arg1 : i32, i32, i32
  }
}

module attributes {stable_mosaic.version = 11 : i64} {
  func.func @kernel(%arg0: i32, %arg1: i32, %arg2: memref<2x4x640xf32, #tpu.memory_space<any>>, %arg3: memref<9x8x4xf32, #tpu.memory_space<vmem>>, %arg4: memref<8x1xf32, #tpu.memory_space<vmem>>, %arg5: memref<1x8x256xf32, #tpu.memory_space<vmem>>, %arg6: memref<2x4x256xf32, #tpu.memory_space<vmem>>, %arg7: memref<2x!tpu.dma_semaphore, #tpu.memory_space<semaphore_mem>>) attributes {dimension_semantics = [#tpu.dimension_semantics<parallel>, #tpu.dimension_semantics<parallel>], iteration_bounds = array<i64: 2, 2>, scalar_prefetch = 0 : i64, scratch_operands = 2 : i64, tpu.core_type = #tpu.core_type<tc>, window_params = [{}, {pipeline_mode = #tpu.pipeline_mode<synchronous>, transform_indices = @transform_1, window_bounds = array<i64: 9, 8, 4>}, {pipeline_mode = #tpu.pipeline_mode<synchronous>, transform_indices = @transform_2, window_bounds = array<i64: 8, 1>}, {transform_indices = @transform_3, window_bounds = array<i64: 1, 8, 256>}]} {
    %c256_i32 = arith.constant 256 : i32
    %0 = arith.muli %arg1, %c256_i32 : i32
    %1 = tpu.assume_multiple %0, 256 : i32
    %c0_i32 = arith.constant 0 : i32
    %2 = arith.addi %1, %c0_i32 : i32
    %c0_i32_0 = arith.constant 0 : i32
    %c0_i32_1 = arith.constant 0 : i32
    %c0_i32_2 = arith.constant 0 : i32
    %3 = tpu.memref_slice %arg2[%arg0, %c0_i32_2, %2] : memref<2x4x640xf32, #tpu.memory_space<any>> -> memref<1x4x256xf32, #tpu.memory_space<any>>
    %4 = tpu.memref_squeeze %3 : memref<1x4x256xf32, #tpu.memory_space<any>> -> memref<4x256xf32, #tpu.memory_space<any>>
    %c0_i32_3 = arith.constant 0 : i32
    %c0_i32_4 = arith.constant 0 : i32
    %5 = tpu.memref_slice %arg6[%c0_i32_0, %c0_i32_3, %c0_i32_4] : memref<2x4x256xf32, #tpu.memory_space<vmem>> -> memref<1x4x256xf32, #tpu.memory_space<vmem>>
    %6 = tpu.memref_squeeze %5 : memref<1x4x256xf32, #tpu.memory_space<vmem>> -> memref<4x256xf32, #tpu.memory_space<vmem>>
    %7 = tpu.memref_slice %arg7[%c0_i32_1] : memref<2x!tpu.dma_semaphore, #tpu.memory_space<semaphore_mem>> -> memref<1x!tpu.dma_semaphore, #tpu.memory_space<semaphore_mem>>
    %8 = tpu.memref_squeeze %7 : memref<1x!tpu.dma_semaphore, #tpu.memory_space<semaphore_mem>> -> memref<!tpu.dma_semaphore, #tpu.memory_space<semaphore_mem>>
    tpu.enqueue_dma source(%4 : memref<4x256xf32, #tpu.memory_space<any>>) target(%6 : memref<4x256xf32, #tpu.memory_space<vmem>>) target_semaphore(%8 : memref<!tpu.dma_semaphore, #tpu.memory_space<semaphore_mem>>)
    %c128_i32 = arith.constant 128 : i32
    %9 = arith.addi %1, %c128_i32 : i32
    %c1_i32 = arith.constant 1 : i32
    %c1_i32_5 = arith.constant 1 : i32
    %c0_i32_6 = arith.constant 0 : i32
    %10 = tpu.memref_slice %arg2[%arg0, %c0_i32_6, %9] : memref<2x4x640xf32, #tpu.memory_space<any>> -> memref<1x4x256xf32, #tpu.memory_space<any>>
    %11 = tpu.memref_squeeze %10 : memref<1x4x256xf32, #tpu.memory_space<any>> -> memref<4x256xf32, #tpu.memory_space<any>>
    %c0_i32_7 = arith.constant 0 : i32
    %c0_i32_8 = arith.constant 0 : i32
    %12 = tpu.memref_slice %arg6[%c1_i32, %c0_i32_7, %c0_i32_8] : memref<2x4x256xf32, #tpu.memory_space<vmem>> -> memref<1x4x256xf32, #tpu.memory_space<vmem>>
    %13 = tpu.memref_squeeze %12 : memref<1x4x256xf32, #tpu.memory_space<vmem>> -> memref<4x256xf32, #tpu.memory_space<vmem>>
    %14 = tpu.memref_slice %arg7[%c1_i32_5] : memref<2x!tpu.dma_semaphore, #tpu.memory_space<semaphore_mem>> -> memref<1x!tpu.dma_semaphore, #tpu.memory_space<semaphore_mem>>
    %15 = tpu.memref_squeeze %14 : memref<1x!tpu.dma_semaphore, #tpu.memory_space<semaphore_mem>> -> memref<!tpu.dma_semaphore, #tpu.memory_space<semaphore_mem>>
    tpu.enqueue_dma source(%11 : memref<4x256xf32, #tpu.memory_space<any>>) target(%13 : memref<4x256xf32, #tpu.memory_space<vmem>>) target_semaphore(%15 : memref<!tpu.dma_semaphore, #tpu.memory_space<semaphore_mem>>)
    %c0 = arith.constant 0 : index
    %c0_9 = arith.constant 0 : index
    %c0_10 = arith.constant 0 : index
    %16 = vector.load %arg3[%c0, %c0_9, %c0_10] : memref<9x8x4xf32, #tpu.memory_space<vmem>>, vector<1x8x4xf32>
    %17 = vector.shape_cast %16 : vector<1x8x4xf32> to vector<8x4xf32>
    %c1 = arith.constant 1 : index
    %c0_11 = arith.constant 0 : index
    %c0_12 = arith.constant 0 : index
    %18 = vector.load %arg3[%c1, %c0_11, %c0_12] : memref<9x8x4xf32, #tpu.memory_space<vmem>>, vector<1x8x4xf32>
    %19 = vector.shape_cast %18 : vector<1x8x4xf32> to vector<8x4xf32>
    %c2 = arith.constant 2 : index
    %c0_13 = arith.constant 0 : index
    %c0_14 = arith.constant 0 : index
    %20 = vector.load %arg3[%c2, %c0_13, %c0_14] : memref<9x8x4xf32, #tpu.memory_space<vmem>>, vector<1x8x4xf32>
    %21 = vector.shape_cast %20 : vector<1x8x4xf32> to vector<8x4xf32>
    %c3 = arith.constant 3 : index
    %c0_15 = arith.constant 0 : index
    %c0_16 = arith.constant 0 : index
    %22 = vector.load %arg3[%c3, %c0_15, %c0_16] : memref<9x8x4xf32, #tpu.memory_space<vmem>>, vector<1x8x4xf32>
    %23 = vector.shape_cast %22 : vector<1x8x4xf32> to vector<8x4xf32>
    %c4 = arith.constant 4 : index
    %c0_17 = arith.constant 0 : index
    %c0_18 = arith.constant 0 : index
    %24 = vector.load %arg3[%c4, %c0_17, %c0_18] : memref<9x8x4xf32, #tpu.memory_space<vmem>>, vector<1x8x4xf32>
    %25 = vector.shape_cast %24 : vector<1x8x4xf32> to vector<8x4xf32>
    %c5 = arith.constant 5 : index
    %c0_19 = arith.constant 0 : index
    %c0_20 = arith.constant 0 : index
    %26 = vector.load %arg3[%c5, %c0_19, %c0_20] : memref<9x8x4xf32, #tpu.memory_space<vmem>>, vector<1x8x4xf32>
    %27 = vector.shape_cast %26 : vector<1x8x4xf32> to vector<8x4xf32>
    %c6 = arith.constant 6 : index
    %c0_21 = arith.constant 0 : index
    %c0_22 = arith.constant 0 : index
    %28 = vector.load %arg3[%c6, %c0_21, %c0_22] : memref<9x8x4xf32, #tpu.memory_space<vmem>>, vector<1x8x4xf32>
    %29 = vector.shape_cast %28 : vector<1x8x4xf32> to vector<8x4xf32>
    %c7 = arith.constant 7 : index
    %c0_23 = arith.constant 0 : index
    %c0_24 = arith.constant 0 : index
    %30 = vector.load %arg3[%c7, %c0_23, %c0_24] : memref<9x8x4xf32, #tpu.memory_space<vmem>>, vector<1x8x4xf32>
    %31 = vector.shape_cast %30 : vector<1x8x4xf32> to vector<8x4xf32>
    %c8 = arith.constant 8 : index
    %c0_25 = arith.constant 0 : index
    %c0_26 = arith.constant 0 : index
    %32 = vector.load %arg3[%c8, %c0_25, %c0_26] : memref<9x8x4xf32, #tpu.memory_space<vmem>>, vector<1x8x4xf32>
    %33 = vector.shape_cast %32 : vector<1x8x4xf32> to vector<8x4xf32>
    %c0_27 = arith.constant 0 : index
    %c0_28 = arith.constant 0 : index
    %34 = vector.load %arg4[%c0_27, %c0_28] : memref<8x1xf32, #tpu.memory_space<vmem>>, vector<8x1xf32>
    %c0_i32_29 = arith.constant 0 : i32
    %c0_i32_30 = arith.constant 0 : i32
    %c0_i32_31 = arith.constant 0 : i32
    %35 = tpu.memref_slice %arg2[%arg0, %c0_i32_31, %2] : memref<2x4x640xf32, #tpu.memory_space<any>> -> memref<1x4x256xf32, #tpu.memory_space<any>>
    %36 = tpu.memref_squeeze %35 : memref<1x4x256xf32, #tpu.memory_space<any>> -> memref<4x256xf32, #tpu.memory_space<any>>
    %c0_i32_32 = arith.constant 0 : i32
    %c0_i32_33 = arith.constant 0 : i32
    %37 = tpu.memref_slice %arg6[%c0_i32_29, %c0_i32_32, %c0_i32_33] : memref<2x4x256xf32, #tpu.memory_space<vmem>> -> memref<1x4x256xf32, #tpu.memory_space<vmem>>
    %38 = tpu.memref_squeeze %37 : memref<1x4x256xf32, #tpu.memory_space<vmem>> -> memref<4x256xf32, #tpu.memory_space<vmem>>
    %39 = tpu.memref_slice %arg7[%c0_i32_30] : memref<2x!tpu.dma_semaphore, #tpu.memory_space<semaphore_mem>> -> memref<1x!tpu.dma_semaphore, #tpu.memory_space<semaphore_mem>>
    %40 = tpu.memref_squeeze %39 : memref<1x!tpu.dma_semaphore, #tpu.memory_space<semaphore_mem>> -> memref<!tpu.dma_semaphore, #tpu.memory_space<semaphore_mem>>
    tpu.wait_dma2 semaphore(%40 : memref<!tpu.dma_semaphore, #tpu.memory_space<semaphore_mem>>) src(%36 : memref<4x256xf32, #tpu.memory_space<any>>) dst(%38 : memref<4x256xf32, #tpu.memory_space<vmem>>)
    %c0_34 = arith.constant 0 : index
    %c0_35 = arith.constant 0 : index
    %c0_36 = arith.constant 0 : index
    %41 = vector.load %arg6[%c0_34, %c0_35, %c0_36] : memref<2x4x256xf32, #tpu.memory_space<vmem>>, vector<1x4x128xf32>
    %42 = vector.shape_cast %41 : vector<1x4x128xf32> to vector<4x128xf32>
    %cst = arith.constant dense<0.000000e+00> : vector<8x128xf32>
    %43 = tpu.matmul %17, %42, %cst {dimension_numbers = #tpu.dot_dimension_numbers<[1], [0], [0], [1], [0, 0, 1, 1], [], []>} : vector<8x4xf32>, vector<4x128xf32>, vector<8x128xf32> -> vector<8x128xf32>
    %c0_37 = arith.constant 0 : index
    %c0_38 = arith.constant 0 : index
    %c1_39 = arith.constant 1 : index
    %44 = vector.load %arg6[%c0_37, %c0_38, %c1_39] : memref<2x4x256xf32, #tpu.memory_space<vmem>>, vector<1x4x128xf32>
    %45 = vector.shape_cast %44 : vector<1x4x128xf32> to vector<4x128xf32>
    %cst_40 = arith.constant dense<0.000000e+00> : vector<8x128xf32>
    %46 = tpu.matmul %19, %45, %cst_40 {dimension_numbers = #tpu.dot_dimension_numbers<[1], [0], [0], [1], [0, 0, 1, 1], [], []>} : vector<8x4xf32>, vector<4x128xf32>, vector<8x128xf32> -> vector<8x128xf32>
    %47 = arith.addf %43, %46 : vector<8x128xf32>
    %c0_41 = arith.constant 0 : index
    %c0_42 = arith.constant 0 : index
    %c2_43 = arith.constant 2 : index
    %48 = vector.load %arg6[%c0_41, %c0_42, %c2_43] : memref<2x4x256xf32, #tpu.memory_space<vmem>>, vector<1x4x128xf32>
    %49 = vector.shape_cast %48 : vector<1x4x128xf32> to vector<4x128xf32>
    %cst_44 = arith.constant dense<0.000000e+00> : vector<8x128xf32>
    %50 = tpu.matmul %21, %49, %cst_44 {dimension_numbers = #tpu.dot_dimension_numbers<[1], [0], [0], [1], [0, 0, 1, 1], [], []>} : vector<8x4xf32>, vector<4x128xf32>, vector<8x128xf32> -> vector<8x128xf32>
    %51 = arith.addf %47, %50 : vector<8x128xf32>
    %c0_45 = arith.constant 0 : index
    %c0_46 = arith.constant 0 : index
    %c18 = arith.constant 18 : index
    %52 = vector.load %arg6[%c0_45, %c0_46, %c18] : memref<2x4x256xf32, #tpu.memory_space<vmem>>, vector<1x4x128xf32>
    %53 = vector.shape_cast %52 : vector<1x4x128xf32> to vector<4x128xf32>
    %cst_47 = arith.constant dense<0.000000e+00> : vector<8x128xf32>
    %54 = tpu.matmul %23, %53, %cst_47 {dimension_numbers = #tpu.dot_dimension_numbers<[1], [0], [0], [1], [0, 0, 1, 1], [], []>} : vector<8x4xf32>, vector<4x128xf32>, vector<8x128xf32> -> vector<8x128xf32>
    %55 = arith.addf %51, %54 : vector<8x128xf32>
    %c0_48 = arith.constant 0 : index
    %c0_49 = arith.constant 0 : index
    %c19 = arith.constant 19 : index
    %56 = vector.load %arg6[%c0_48, %c0_49, %c19] : memref<2x4x256xf32, #tpu.memory_space<vmem>>, vector<1x4x128xf32>
    %57 = vector.shape_cast %56 : vector<1x4x128xf32> to vector<4x128xf32>
    %cst_50 = arith.constant dense<0.000000e+00> : vector<8x128xf32>
    %58 = tpu.matmul %25, %57, %cst_50 {dimension_numbers = #tpu.dot_dimension_numbers<[1], [0], [0], [1], [0, 0, 1, 1], [], []>} : vector<8x4xf32>, vector<4x128xf32>, vector<8x128xf32> -> vector<8x128xf32>
    %59 = arith.addf %55, %58 : vector<8x128xf32>
    %c0_51 = arith.constant 0 : index
    %c0_52 = arith.constant 0 : index
    %c20 = arith.constant 20 : index
    %60 = vector.load %arg6[%c0_51, %c0_52, %c20] : memref<2x4x256xf32, #tpu.memory_space<vmem>>, vector<1x4x128xf32>
    %61 = vector.shape_cast %60 : vector<1x4x128xf32> to vector<4x128xf32>
    %cst_53 = arith.constant dense<0.000000e+00> : vector<8x128xf32>
    %62 = tpu.matmul %27, %61, %cst_53 {dimension_numbers = #tpu.dot_dimension_numbers<[1], [0], [0], [1], [0, 0, 1, 1], [], []>} : vector<8x4xf32>, vector<4x128xf32>, vector<8x128xf32> -> vector<8x128xf32>
    %63 = arith.addf %59, %62 : vector<8x128xf32>
    %c0_54 = arith.constant 0 : index
    %c0_55 = arith.constant 0 : index
    %c36 = arith.constant 36 : index
    %64 = vector.load %arg6[%c0_54, %c0_55, %c36] : memref<2x4x256xf32, #tpu.memory_space<vmem>>, vector<1x4x128xf32>
    %65 = vector.shape_cast %64 : vector<1x4x128xf32> to vector<4x128xf32>
    %cst_56 = arith.constant dense<0.000000e+00> : vector<8x128xf32>
    %66 = tpu.matmul %29, %65, %cst_56 {dimension_numbers = #tpu.dot_dimension_numbers<[1], [0], [0], [1], [0, 0, 1, 1], [], []>} : vector<8x4xf32>, vector<4x128xf32>, vector<8x128xf32> -> vector<8x128xf32>
    %67 = arith.addf %63, %66 : vector<8x128xf32>
    %c0_57 = arith.constant 0 : index
    %c0_58 = arith.constant 0 : index
    %c37 = arith.constant 37 : index
    %68 = vector.load %arg6[%c0_57, %c0_58, %c37] : memref<2x4x256xf32, #tpu.memory_space<vmem>>, vector<1x4x128xf32>
    %69 = vector.shape_cast %68 : vector<1x4x128xf32> to vector<4x128xf32>
    %cst_59 = arith.constant dense<0.000000e+00> : vector<8x128xf32>
    %70 = tpu.matmul %31, %69, %cst_59 {dimension_numbers = #tpu.dot_dimension_numbers<[1], [0], [0], [1], [0, 0, 1, 1], [], []>} : vector<8x4xf32>, vector<4x128xf32>, vector<8x128xf32> -> vector<8x128xf32>
    %71 = arith.addf %67, %70 : vector<8x128xf32>
    %c0_60 = arith.constant 0 : index
    %c0_61 = arith.constant 0 : index
    %c38 = arith.constant 38 : index
    %72 = vector.load %arg6[%c0_60, %c0_61, %c38] : memref<2x4x256xf32, #tpu.memory_space<vmem>>, vector<1x4x128xf32>
    %73 = vector.shape_cast %72 : vector<1x4x128xf32> to vector<4x128xf32>
    %cst_62 = arith.constant dense<0.000000e+00> : vector<8x128xf32>
    %74 = tpu.matmul %33, %73, %cst_62 {dimension_numbers = #tpu.dot_dimension_numbers<[1], [0], [0], [1], [0, 0, 1, 1], [], []>} : vector<8x4xf32>, vector<4x128xf32>, vector<8x128xf32> -> vector<8x128xf32>
    %75 = arith.addf %71, %74 : vector<8x128xf32>
    %76 = vector.broadcast %34 : vector<8x1xf32> to vector<8x128xf32>
    %77 = arith.addf %75, %76 : vector<8x128xf32>
    %cst_63 = arith.constant 0.000000e+00 : f32
    %78 = vector.broadcast %cst_63 : f32 to vector<8x128xf32>
    %79 = arith.cmpf oge, %77, %78 : vector<8x128xf32>
    %cst_64 = arith.constant 2.000000e-01 : f32
    %80 = vector.broadcast %cst_64 : f32 to vector<8x128xf32>
    %81 = arith.mulf %80, %77 : vector<8x128xf32>
    %82 = arith.select %79, %77, %81 : vector<8x128xi1>, vector<8x128xf32>
    %c0_65 = arith.constant 0 : index
    %c0_66 = arith.constant 0 : index
    %c0_67 = arith.constant 0 : index
    %83 = vector.load %arg5[%c0_65, %c0_66, %c0_67] : memref<1x8x256xf32, #tpu.memory_space<vmem>>, vector<1x8x128xf32>
    %84 = vector.shape_cast %83 : vector<1x8x128xf32> to vector<8x128xf32>
    %85 = vector.shape_cast %82 : vector<8x128xf32> to vector<1x8x128xf32>
    tpu.vector_store %arg5[%c0_65, %c0_66, %c0_67], %85 {strides = array<i32>} : memref<1x8x256xf32, #tpu.memory_space<vmem>>, vector<1x8x128xf32>,
    %c1_i32_68 = arith.constant 1 : i32
    %c1_i32_69 = arith.constant 1 : i32
    %c0_i32_70 = arith.constant 0 : i32
    %86 = tpu.memref_slice %arg2[%arg0, %c0_i32_70, %9] : memref<2x4x640xf32, #tpu.memory_space<any>> -> memref<1x4x256xf32, #tpu.memory_space<any>>
    %87 = tpu.memref_squeeze %86 : memref<1x4x256xf32, #tpu.memory_space<any>> -> memref<4x256xf32, #tpu.memory_space<any>>
    %c0_i32_71 = arith.constant 0 : i32
    %c0_i32_72 = arith.constant 0 : i32
    %88 = tpu.memref_slice %arg6[%c1_i32_68, %c0_i32_71, %c0_i32_72] : memref<2x4x256xf32, #tpu.memory_space<vmem>> -> memref<1x4x256xf32, #tpu.memory_space<vmem>>
    %89 = tpu.memref_squeeze %88 : memref<1x4x256xf32, #tpu.memory_space<vmem>> -> memref<4x256xf32, #tpu.memory_space<vmem>>
    %90 = tpu.memref_slice %arg7[%c1_i32_69] : memref<2x!tpu.dma_semaphore, #tpu.memory_space<semaphore_mem>> -> memref<1x!tpu.dma_semaphore, #tpu.memory_space<semaphore_mem>>
    %91 = tpu.memref_squeeze %90 : memref<1x!tpu.dma_semaphore, #tpu.memory_space<semaphore_mem>> -> memref<!tpu.dma_semaphore, #tpu.memory_space<semaphore_mem>>
    tpu.wait_dma2 semaphore(%91 : memref<!tpu.dma_semaphore, #tpu.memory_space<semaphore_mem>>) src(%87 : memref<4x256xf32, #tpu.memory_space<any>>) dst(%89 : memref<4x256xf32, #tpu.memory_space<vmem>>)
    %c1_73 = arith.constant 1 : index
    %c0_74 = arith.constant 0 : index
    %c0_75 = arith.constant 0 : index
    %92 = vector.load %arg6[%c1_73, %c0_74, %c0_75] : memref<2x4x256xf32, #tpu.memory_space<vmem>>, vector<1x4x128xf32>
    %93 = vector.shape_cast %92 : vector<1x4x128xf32> to vector<4x128xf32>
    %cst_76 = arith.constant dense<0.000000e+00> : vector<8x128xf32>
    %94 = tpu.matmul %17, %93, %cst_76 {dimension_numbers = #tpu.dot_dimension_numbers<[1], [0], [0], [1], [0, 0, 1, 1], [], []>} : vector<8x4xf32>, vector<4x128xf32>, vector<8x128xf32> -> vector<8x128xf32>
    %c1_77 = arith.constant 1 : index
    %c0_78 = arith.constant 0 : index
    %c1_79 = arith.constant 1 : index
    %95 = vector.load %arg6[%c1_77, %c0_78, %c1_79] : memref<2x4x256xf32, #tpu.memory_space<vmem>>, vector<1x4x128xf32>
    %96 = vector.shape_cast %95 : vector<1x4x128xf32> to vector<4x128xf32>
    %cst_80 = arith.constant dense<0.000000e+00> : vector<8x128xf32>
    %97 = tpu.matmul %19, %96, %cst_80 {dimension_numbers = #tpu.dot_dimension_numbers<[1], [0], [0], [1], [0, 0, 1, 1], [], []>} : vector<8x4xf32>, vector<4x128xf32>, vector<8x128xf32> -> vector<8x128xf32>
    %98 = arith.addf %94, %97 : vector<8x128xf32>
    %c1_81 = arith.constant 1 : index
    %c0_82 = arith.constant 0 : index
    %c2_83 = arith.constant 2 : index
    %99 = vector.load %arg6[%c1_81, %c0_82, %c2_83] : memref<2x4x256xf32, #tpu.memory_space<vmem>>, vector<1x4x128xf32>
    %100 = vector.shape_cast %99 : vector<1x4x128xf32> to vector<4x128xf32>
    %cst_84 = arith.constant dense<0.000000e+00> : vector<8x128xf32>
    %101 = tpu.matmul %21, %100, %cst_84 {dimension_numbers = #tpu.dot_dimension_numbers<[1], [0], [0], [1], [0, 0, 1, 1], [], []>} : vector<8x4xf32>, vector<4x128xf32>, vector<8x128xf32> -> vector<8x128xf32>
    %102 = arith.addf %98, %101 : vector<8x128xf32>
    %c1_85 = arith.constant 1 : index
    %c0_86 = arith.constant 0 : index
    %c18_87 = arith.constant 18 : index
    %103 = vector.load %arg6[%c1_85, %c0_86, %c18_87] : memref<2x4x256xf32, #tpu.memory_space<vmem>>, vector<1x4x128xf32>
    %104 = vector.shape_cast %103 : vector<1x4x128xf32> to vector<4x128xf32>
    %cst_88 = arith.constant dense<0.000000e+00> : vector<8x128xf32>
    %105 = tpu.matmul %23, %104, %cst_88 {dimension_numbers = #tpu.dot_dimension_numbers<[1], [0], [0], [1], [0, 0, 1, 1], [], []>} : vector<8x4xf32>, vector<4x128xf32>, vector<8x128xf32> -> vector<8x128xf32>
    %106 = arith.addf %102, %105 : vector<8x128xf32>
    %c1_89 = arith.constant 1 : index
    %c0_90 = arith.constant 0 : index
    %c19_91 = arith.constant 19 : index
    %107 = vector.load %arg6[%c1_89, %c0_90, %c19_91] : memref<2x4x256xf32, #tpu.memory_space<vmem>>, vector<1x4x128xf32>
    %108 = vector.shape_cast %107 : vector<1x4x128xf32> to vector<4x128xf32>
    %cst_92 = arith.constant dense<0.000000e+00> : vector<8x128xf32>
    %109 = tpu.matmul %25, %108, %cst_92 {dimension_numbers = #tpu.dot_dimension_numbers<[1], [0], [0], [1], [0, 0, 1, 1], [], []>} : vector<8x4xf32>, vector<4x128xf32>, vector<8x128xf32> -> vector<8x128xf32>
    %110 = arith.addf %106, %109 : vector<8x128xf32>
    %c1_93 = arith.constant 1 : index
    %c0_94 = arith.constant 0 : index
    %c20_95 = arith.constant 20 : index
    %111 = vector.load %arg6[%c1_93, %c0_94, %c20_95] : memref<2x4x256xf32, #tpu.memory_space<vmem>>, vector<1x4x128xf32>
    %112 = vector.shape_cast %111 : vector<1x4x128xf32> to vector<4x128xf32>
    %cst_96 = arith.constant dense<0.000000e+00> : vector<8x128xf32>
    %113 = tpu.matmul %27, %112, %cst_96 {dimension_numbers = #tpu.dot_dimension_numbers<[1], [0], [0], [1], [0, 0, 1, 1], [], []>} : vector<8x4xf32>, vector<4x128xf32>, vector<8x128xf32> -> vector<8x128xf32>
    %114 = arith.addf %110, %113 : vector<8x128xf32>
    %c1_97 = arith.constant 1 : index
    %c0_98 = arith.constant 0 : index
    %c36_99 = arith.constant 36 : index
    %115 = vector.load %arg6[%c1_97, %c0_98, %c36_99] : memref<2x4x256xf32, #tpu.memory_space<vmem>>, vector<1x4x128xf32>
    %116 = vector.shape_cast %115 : vector<1x4x128xf32> to vector<4x128xf32>
    %cst_100 = arith.constant dense<0.000000e+00> : vector<8x128xf32>
    %117 = tpu.matmul %29, %116, %cst_100 {dimension_numbers = #tpu.dot_dimension_numbers<[1], [0], [0], [1], [0, 0, 1, 1], [], []>} : vector<8x4xf32>, vector<4x128xf32>, vector<8x128xf32> -> vector<8x128xf32>
    %118 = arith.addf %114, %117 : vector<8x128xf32>
    %c1_101 = arith.constant 1 : index
    %c0_102 = arith.constant 0 : index
    %c37_103 = arith.constant 37 : index
    %119 = vector.load %arg6[%c1_101, %c0_102, %c37_103] : memref<2x4x256xf32, #tpu.memory_space<vmem>>, vector<1x4x128xf32>
    %120 = vector.shape_cast %119 : vector<1x4x128xf32> to vector<4x128xf32>
    %cst_104 = arith.constant dense<0.000000e+00> : vector<8x128xf32>
    %121 = tpu.matmul %31, %120, %cst_104 {dimension_numbers = #tpu.dot_dimension_numbers<[1], [0], [0], [1], [0, 0, 1, 1], [], []>} : vector<8x4xf32>, vector<4x128xf32>, vector<8x128xf32> -> vector<8x128xf32>
    %122 = arith.addf %118, %121 : vector<8x128xf32>
    %c1_105 = arith.constant 1 : index
    %c0_106 = arith.constant 0 : index
    %c38_107 = arith.constant 38 : index
    %123 = vector.load %arg6[%c1_105, %c0_106, %c38_107] : memref<2x4x256xf32, #tpu.memory_space<vmem>>, vector<1x4x128xf32>
    %124 = vector.shape_cast %123 : vector<1x4x128xf32> to vector<4x128xf32>
    %cst_108 = arith.constant dense<0.000000e+00> : vector<8x128xf32>
    %125 = tpu.matmul %33, %124, %cst_108 {dimension_numbers = #tpu.dot_dimension_numbers<[1], [0], [0], [1], [0, 0, 1, 1], [], []>} : vector<8x4xf32>, vector<4x128xf32>, vector<8x128xf32> -> vector<8x128xf32>
    %126 = arith.addf %122, %125 : vector<8x128xf32>
    %127 = vector.broadcast %34 : vector<8x1xf32> to vector<8x128xf32>
    %128 = arith.addf %126, %127 : vector<8x128xf32>
    %cst_109 = arith.constant 0.000000e+00 : f32
    %129 = vector.broadcast %cst_109 : f32 to vector<8x128xf32>
    %130 = arith.cmpf oge, %128, %129 : vector<8x128xf32>
    %cst_110 = arith.constant 2.000000e-01 : f32
    %131 = vector.broadcast %cst_110 : f32 to vector<8x128xf32>
    %132 = arith.mulf %131, %128 : vector<8x128xf32>
    %133 = arith.select %130, %128, %132 : vector<8x128xi1>, vector<8x128xf32>
    %c0_111 = arith.constant 0 : index
    %c0_112 = arith.constant 0 : index
    %c128 = arith.constant 128 : index
    %134 = vector.load %arg5[%c0_111, %c0_112, %c128] : memref<1x8x256xf32, #tpu.memory_space<vmem>>, vector<1x8x128xf32>
    %135 = vector.shape_cast %134 : vector<1x8x128xf32> to vector<8x128xf32>
    %136 = vector.shape_cast %133 : vector<8x128xf32> to vector<1x8x128xf32>
    tpu.vector_store %arg5[%c0_111, %c0_112, %c128], %136 {strides = array<i32>} : memref<1x8x256xf32, #tpu.memory_space<vmem>>, vector<1x8x128xf32>,
    return
  }
  func.func @transform_1(%arg0: i32, %arg1: i32) -> (i32, i32, i32) {
    %c0_i32 = arith.constant 0 : i32
    %c0_i32_0 = arith.constant 0 : i32
    %c0_i32_1 = arith.constant 0 : i32
    %c0_i32_2 = arith.constant 0 : i32
    return %c0_i32, %c0_i32_0, %c0_i32_1 : i32, i32, i32
  }
  func.func @transform_2(%arg0: i32, %arg1: i32) -> (i32, i32) {
    %c0_i32 = arith.constant 0 : i32
    %c0_i32_0 = arith.constant 0 : i32
    %c0_i32_1 = arith.constant 0 : i32
    return %c0_i32, %c0_i32_0 : i32, i32
  }
  func.func @transform_3(%arg0: i32, %arg1: i32) -> (i32, i32, i32) {
    %c0_i32 = arith.constant 0 : i32
    %c0_i32_0 = arith.constant 0 : i32
    return %arg0, %c0_i32, %arg1 : i32, i32, i32
  }
}

</mosaic_0001>

<bundles_post_ra>
// kernel: tpu_custom_call.1
= control target key start
LH: loop header
LB: loop body
LE: loop exit
PB: predicated region body
PF: predicated region fallthrough
CT: control target
= control target key end

     0   :  { %8 = vsyncpa [#allocation5], 0  ;;  %s2628_s0 = inlined_call_operand.vmem [shape: f32[2,4,640], index: 0, kind: input, shape index: {}]   ;;  %s2629_s1 = inlined_call_operand.vmem [shape: f32[9,8,4], index: 1, kind: input, shape index: {}]   ;;  %s2630_s2 = inlined_call_operand.vmem [shape: f32[8,1], index: 2, kind: input, shape index: {}]   ;;  %s2631_s3 = inlined_call_operand.hbm [shape: f32[2,8,512], index: 3, kind: output, shape index: {}]  }
   0x1   :  { %10 = vsyncpa [#allocation5 + $0x1], 0  ;;  %s2273_s12 = smov 0   ;;  %s2275_s13 = smov 0  }
   0x2   :  { %s2277_s14 = smov 0   ;;  %s2279_s15 = smov 0  }
   0x3   :  { %s2281_s16 = smov 0   ;;  %s2283_s17 = smov 0  }
   0x4   :  { %s2285_s18 = smov 0   ;;  %s2287_s19 = smov 0  }
   0x5 LB: > { %2636 = sst [smem:[#allocation11_spill]] %s2235_s18  ;;  %s1870_s20 = sadd.s32 4294967295, %s2239_s19   ;;  %s2239_s19 = sphi %s2287_s19, %s16_s19   ;;  %s2235_s18 = sphi %s2285_s18, %s2644_s18   ;;  %s2231_s17 = sphi %s2283_s17, %s2649_s17   ;;  %s2227_s16 = sphi %s2281_s16, %s2642_s16   ;;  %s2223_s15 = sphi %s2279_s15, %s2648_s15   ;;  %s2219_s14 = sphi %s2277_s14, %s2647_s14   ;;  %s2215_s13 = sphi %s2275_s13, %s2646_s13   ;;  %s2211_s12 = sphi %s2273_s12, %s2645_s12  }
   0x6   : > { %s1871_s21 = sadd.s32 4294967294, %s2239_s19   ;;  %s25_s22 = sadd.s32 1, %s2231_s17 }
   0x7   : > { %p26_p0 = scmp.ge.s32.totalorder %s25_s22, 2  ;;  %s28_s23 = sadd.s32 1, %s2235_s18 }
   0x8   : > { %p89_p1 = scmp.ne.s32.totalorder %s2219_s14, %s2215_s13  ;;  %p90_p2 = scmp.eq.s32.totalorder %s1870_s20, 3 }
   0x9   : > { %s2651_s22 = smov (%p26_p0, %s25_s22), 0  ;;  %s2653_s23 = smov (!%p26_p0, %s28_s23), %s2235_s18 }
   0xa   : > { %2637 = sst [smem:[#allocation12_spill]] %s2651_s22  ;;  %s75_s24 = ssub.s32 %s2231_s17, %s2651_s22 }
   0xb   : > { %p2324_p3 = por %p90_p2, %p89_p1  ;;  %p30_p4 = scmp.ge.s32.totalorder %s2653_s23, 2 }
   0xc   : > { %p95_p5 = scmp.ne.s32.totalorder %s2215_s13, %s2211_s12  ;;  %p96_p6 = scmp.eq.s32.totalorder %s1871_s21, 3 }
   0xd   : > { %p1873_p7 = scmp.ge.s32.totalorder %s2239_s19, 1  ;;  %s2655_s23 = smov (%p30_p4, %s2653_s23), 0 }
   0xe   : > { %2639 = sst [smem:[#allocation13_spill]] %s2655_s23  ;;  %p2333_p8 = por %p96_p6, %p95_p5 }
   0xf   : > { %p120_p9 = scmp.lt.s32.totalorder %s2239_s19, 5  ;;  %s74_s27 = ssub.s32 %s2235_s18, %s2655_s23 }
  0x10   : > { %s79_s28 = sadd.s32 1, %s2219_s14  ;;  %s76_s29 = sor.u32 %s75_s24, %s74_s27 }
  0x11   : > { %p121_p10 = pnand %p1873_p7, %p120_p9  ;;  %p77_p11 = scmp.eq.s32.totalorder %s76_s29, 0 }
  0x12   : > { %s2635_s4 = sand.u32 (!%p121_p10), 1, %s2215_s13   ;;  %s1875_s5 = sshll.u32 (!%p121_p10), %s2223_s15, 8 }
  0x13   : > { %s2342_s30 = scalar_select %p77_p11, %s2219_s14, %s79_s28  }
  0x14   : > { %124 = sbr.rel (%p121_p10) target bundleno = 790 (0x316), region = 28  ;;  %s1874_s6 = sshll.u32 (!%p121_p10), %s2635_s4, 4 }
  0x15   : > { %s139_s7 = sshra.s32 (!%p121_p10), %s1875_s5, 7  ;;  %s141_s8 = smul.u32 (!%p121_p10), 5, %s2227_s16 }
  0x16   : > { %s2352_s24 = scalar_lea.vmem (!%p121_p10), [#allocation4], %s1874_s6 }
  0x17   : > { %s142_s9 = sadd.s32 (!%p121_p10), %s141_s8, %s139_s7 }
  0x18   : > { %s1876_s10 = sshll.u32 (!%p121_p10), %s142_s9, 2 }
  0x19   : > { %s144_s21 = scalar_lea.vmem (!%p121_p10), %s2628_s0, %s1876_s10 }
  0x1a   : > { %v177_v0 = vld [vmem:[%s144_s21] sm:$0xff] (!%p121_p10) }
  0x1b   : > { %178 = vst [vmem:[#allocation2] sm:$0xff] %v177_v0 }
  0x1c   : > { %186 = vsyncadd [#allocation3], 128  ;;  %s187_s27 = sadd.s32 128, %s1875_s5 }
  0x1d   : > { %s188_s28 = sshra.s32 %s187_s27, 7 }
  0x1e   : > { %s190_s29 = sadd.s32 %s188_s28, %s141_s8 }
  0x1f   : > { %s1877_s23 = sshll.u32 %s190_s29, 2 }
  0x20   : > { %s192_s4 = scalar_lea.vmem %s2628_s0, %s1877_s23 }
  0x21   : > { %v227_v1 = vld [vmem:[%s192_s4] sm:$0xff] }
  0x22   : > { %228 = vst [vmem:[#allocation2 + $0x8] sm:$0xff] %v227_v1 }
  0x23   : > { %236 = vsyncadd [#allocation3 + $0x1], 128  ;;  %v2360_v2 = vld [vmem:[%s2629_s1] sm:$0xff]  ;;  %v2365_v3 = vld [vmem:[%s2629_s1 + $0x8] sm:$0xff] }
  0x24   : > { %v2370_v4 = vld [vmem:[%s2629_s1 + $0x10] sm:$0xff]  ;;  %v2375_v5 = vld [vmem:[%s2629_s1 + $0x18] sm:$0xff]  ;;  %v2380_v6 = vld [vmem:[%s2629_s1 + $0x20] sm:$0xff] }
  0x25   : > { %v2385_v7 = vld [vmem:[%s2629_s1 + $0x28] sm:$0xff]  ;;  %v2390_v8 = vld [vmem:[%s2629_s1 + $0x30] sm:$0xff]  ;;  %v2395_v9 = vld [vmem:[%s2629_s1 + $0x38] sm:$0xff] }
  0x26   : > { %v2400_v10 = vld [vmem:[%s2629_s1 + $0x40] sm:$0xff] }
  0x27   : > { %v254_v11 = vld [vmem:[%s2630_s2] sm:$0xff] }
  0x28   : > { %2201 = dma.done.wait [#allocation3], 128 }
  0x29   : > { %2202 = vsyncadd [#allocation3], 4294967168  ;;  %v2241_v12 = vmov 0.0   ;;  %vm2242_vm0 = vmmov 0   ;;  %vm273_vm1 = vcmask 1043456   ;;  %v422_v13 = vld [vmem:[#allocation2] sm:$0xff] }
  0x2a   : > { %1971 = vmatprep.subr.mxu1 %v2241_v12  ;;  %1966 = vmatprep.subr.mxu0 %v2241_v12  ;;  %v259_v14 = vld [vmem:[#allocation2] sm:$0xf]  ;;  %vm269_vm2 = vcmask 31744   ;;  %s2243_s5 = smov 126   ;;  %v424_v15 = vcombine.high %v422_v13, %v422_v13  ;;  %s2244_s8 = smov 127   ;;  %v2248_v16 = vmov 0  }
  0x2b   : > { %1973 = vmatprep.mubr.msk.f32.mxu1 %vm2242_vm0, %v2241_v12  ;;  %1968 = vmatprep.mubr.msk.f32.mxu0 %vm2242_vm0, %v2241_v12  ;;  %s2245_s18 = smov 110   ;;  %s2246_s22 = smov 109   ;;  %vm514_vm3 = vcmask 900096   ;;  %vm267_vm4 = vcmask 1039360   ;;  %vm429_vm5 = vcmask 1031168   ;;  %vm599_vm6 = vcmask 891904  }
  0x2c   : > { %425 = vrot.lane.b32.xlu1 %v422_v13, %s2243_s5  ;;  %263 = vrot.lane.b32.xlu0 %v422_v13, %s2244_s8  ;;  %s2247_s23 = smov 108   ;;  %s2249_s4 = smov 92   ;;  %vm684_vm7 = vcmask 883712   ;;  %vm769_vm8 = vcmask 752640   ;;  %vm854_vm9 = vcmask 744448   ;;  %vm939_vm10 = vcmask 736256  }
  0x2d   : > { %1972 = vmatpush3.msk.msra.mxu1 %vm273_vm1, %v259_v14  ;;  %2138 = vset.pattern.permute.xlu0 %v2248_v16  ;;  %s2250_s11 = smov 91   ;;  %s2251_s20 = smov 90  }
  0x2e   : > { %1981 = vmatprep.subr.mxu1 %v2241_v12  ;;  %1974 = vmatmul.mubr.msk.f32.vlgmr.msra.gmra.mrb[0].mxu1 %vm269_vm2, %v2360_v2 }
  0x2f   : > { %1983 = vmatprep.mubr.msk.f32.mxu1 %vm2242_vm0, %v2241_v12 }
  0x30   : > { %427 = vrot.lane.b32.xlu1 %v424_v15, %s2243_s5  ;;  %510 = vrot.lane.b32.xlu0 %v422_v13, %s2245_s18 }
  0x34   : > { %512 = vrot.lane.b32.xlu1 %v424_v15, %s2245_s18  ;;  %265 = vrot.lane.b32.xlu0 %v424_v15, %s2244_s8 }
  0x38   : > { %597 = vrot.lane.b32.xlu1 %v424_v15, %s2246_s22  ;;  %595 = vrot.lane.b32.xlu0 %v422_v13, %s2246_s22 }
  0x3c   : > { %682 = vrot.lane.b32.xlu1 %v424_v15, %s2247_s23  ;;  %680 = vrot.lane.b32.xlu0 %v422_v13, %s2247_s23 }
  0x40   : > { %767 = vrot.lane.b32.xlu1 %v424_v15, %s2249_s4  ;;  %765 = vrot.lane.b32.xlu0 %v422_v13, %s2249_s4 }
  0x44   : > { %852 = vrot.lane.b32.xlu1 %v424_v15, %s2250_s11  ;;  %850 = vrot.lane.b32.xlu0 %v422_v13, %s2250_s11 }
  0x48   : > { %937 = vrot.lane.b32.xlu1 %v424_v15, %s2251_s20  ;;  %935 = vrot.lane.b32.xlu0 %v422_v13, %s2251_s20 }
  0x4c   : > { %1019 = vperm.xlu0 %2138, %v254_v11  }
  0x9e   : > { %v426_v17 = vpop.permute.xlu1 %425  ;;  %v264_v18 = vpop.permute.xlu0 %263 }
  0xa2   : > { %v428_v19 = vpop.permute.xlu1 %427  ;;  %v511_v20 = vpop.permute.xlu0 %510 }
  0xa3   : > { %v430_v25 = vsel %vm429_vm5, %v426_v17, %v428_v19 }
  0xa6   : > { %v513_v21 = vpop.permute.xlu1 %512  ;;  %v266_v22 = vpop.permute.xlu0 %265 }
  0xa7   : > { %v515_v23 = vsel %vm514_vm3, %v511_v20, %v513_v21  ;;  %v268_v24 = vsel %vm267_vm4, %v264_v18, %v266_v22 }
  0xa8   : > { %1967 = vmatpush3.msk.msra.mxu0 %vm273_vm1, %v268_v24  ;;  %1982 = vmatpush3.msk.msra.mxu1 %vm273_vm1, %v515_v23 }
  0xa9   : > { %1969 = vmatmul.mubr.msk.f32.vlgmr.msra.gmra.mrb[0].mxu0 %vm269_vm2, %v2365_v3  ;;  %1976 = vmatprep.subr.mxu0 %v2241_v12 }
  0xaa   : > { %v598_v26 = vpop.permute.xlu1 %597  ;;  %1977 = vmatpush3.msk.msra.mxu0 %vm273_vm1, %v430_v25  ;;  %v596_v27 = vpop.permute.xlu0 %595  ;;  %1978 = vmatprep.mubr.msk.f32.mxu0 %vm2242_vm0, %v2241_v12 }
  0xab   : > { %v600_v28 = vsel %vm599_vm6, %v596_v27, %v598_v26  ;;  %1986 = vmatprep.subr.mxu0 %v2241_v12  ;;  %1991 = vmatprep.subr.mxu1 %v2241_v12 }
  0xac   : > { %1984 = vmatmul.mubr.msk.f32.vlgmr.msra.gmra.mrb[2].mxu1 %vm269_vm2, %v2375_v5 }
  0xad   : > { %1979 = vmatmul.mubr.msk.f32.vlgmr.msra.gmra.mrb[2].mxu0 %vm269_vm2, %v2370_v4  ;;  %1993 = vmatprep.mubr.msk.f32.mxu1 %vm2242_vm0, %v2241_v12 }
  0xae   : > { %1987 = vmatpush3.msk.msra.mxu0 %vm273_vm1, %v600_v28  ;;  %v683_v29 = vpop.permute.xlu1 %682  ;;  %v681_v30 = vpop.permute.xlu0 %680  ;;  %1988 = vmatprep.mubr.msk.f32.mxu0 %vm2242_vm0, %v2241_v12 }
  0xaf   : > { %v685_v31 = vsel %vm684_vm7, %v681_v30, %v683_v29  ;;  %1996 = vmatprep.subr.mxu0 %v2241_v12 }
  0xb0   : > { %1992 = vmatpush3.msk.msra.mxu1 %vm273_vm1, %v685_v31 }
  0xb1   : > { %1989 = vmatmul.mubr.msk.f32.vlgmr.msra.gmra.mrb[4].mxu0 %vm269_vm2, %v2380_v6  ;;  %1994 = vmatmul.mubr.msk.f32.vlgmr.msra.gmra.mrb[4].mxu1 %vm269_vm2, %v2385_v7 }
  0xb2   : > { %v768_v32 = vpop.permute.xlu1 %767  ;;  %v766_v33 = vpop.permute.xlu0 %765  ;;  %2001 = vmatprep.subr.mxu1 %v2241_v12  ;;  %1998 = vmatprep.mubr.msk.f32.mxu0 %vm2242_vm0, %v2241_v12 }
  0xb3   : > { %v770_v34 = vsel %vm769_vm8, %v766_v33, %v768_v32  ;;  %2003 = vmatprep.mubr.msk.f32.mxu1 %vm2242_vm0, %v2241_v12 }
  0xb4   : > { %1997 = vmatpush3.msk.msra.mxu0 %vm273_vm1, %v770_v34 }
  0xb5   : > { %1999 = vmatmul.mubr.msk.f32.vlgmr.msra.gmra.mrb[6].mxu0 %vm269_vm2, %v2390_v8  ;;  %2006 = vmatprep.subr.mxu0 %v2241_v12 }
  0xb6   : > { %v853_v35 = vpop.permute.xlu1 %852  ;;  %v851_v36 = vpop.permute.xlu0 %850  ;;  %2008 = vmatprep.mubr.msk.f32.mxu0 %vm2242_vm0, %v2241_v12 }
  0xb7   : > { %v855_v37 = vsel %vm854_vm9, %v851_v36, %v853_v35 }
  0xb8   : > { %2002 = vmatpush3.msk.msra.mxu1 %vm273_vm1, %v855_v37 }
  0xb9   : > { %2004 = vmatmul.mubr.msk.f32.vlgmr.msra.gmra.mrb[6].mxu1 %vm269_vm2, %v2395_v9 }
  0xba   : > { %v938_v38 = vpop.permute.xlu1 %937  ;;  %v936_v39 = vpop.permute.xlu0 %935 }
  0xbb   : > { %v940_v40 = vsel %vm939_vm10, %v936_v39, %v938_v38 }
  0xbc   : > { %2007 = vmatpush3.msk.msra.mxu0 %vm273_vm1, %v940_v40 }
  0xbd   : > { %2009 = vmatmul.mubr.msk.f32.vlgmr.msra.gmra.mrb[8].mxu0 %vm269_vm2, %v2400_v10 }
  0xcb   : > { %v2483_v1 = vpop.permute.xlu0 %1019 }
 0x101   : > { %v418_v41 = vpop.f32.mrb[0].mxu1 }
 0x102   : > { %v1975_v42 = vpop.f32.mrb[1].mxu1 }
 0x17c   : > { %v342_v43 = vpop.f32.mrb[0].mxu0 }
 0x17d   : > { %v419_v44 = vadd.f32 %v418_v41, %v342_v43  ;;  %v1970_v45 = vpop.f32.mrb[1].mxu0 }
 0x17f   : > { %v587_v46 = vpop.f32.mrb[2].mxu1 }
 0x180   : > { %v502_v47 = vpop.f32.mrb[2].mxu0  ;;  %v1985_v48 = vpop.f32.mrb[3].mxu1 }
 0x181   : > { %v506_v49 = vadd.f32 %v502_v47, %v419_v44  ;;  %v1980_v50 = vpop.f32.mrb[3].mxu0 }
 0x183   : > { %v591_v51 = vadd.f32 %v587_v46, %v506_v49 }
 0x184   : > { %v672_v52 = vpop.f32.mrb[4].mxu0  ;;  %v757_v53 = vpop.f32.mrb[4].mxu1 }
 0x185   : > { %v676_v54 = vadd.f32 %v672_v52, %v591_v51  ;;  %v1990_v55 = vpop.f32.mrb[5].mxu0  ;;  %v1995_v56 = vpop.f32.mrb[5].mxu1 }
 0x187   : > { %v761_v57 = vadd.f32 %v757_v53, %v676_v54 }
 0x188   : > { %v842_v58 = vpop.f32.mrb[6].mxu0 }
 0x189   : > { %v846_v59 = vadd.f32 %v842_v58, %v761_v57  ;;  %v2000_v60 = vpop.f32.mrb[7].mxu0 }
 0x18c   : > { %v927_v61 = vpop.f32.mrb[6].mxu1 }
 0x18d   : > { %v931_v62 = vadd.f32 %v927_v61, %v846_v59  ;;  %v2005_v63 = vpop.f32.mrb[7].mxu1 }
 0x190   : > { %v1012_v0 = vpop.f32.mrb[8].mxu0 }
 0x191   : > { %v1016_v11 = vadd.f32 %v1012_v0, %v931_v62  ;;  %v2010_v13 = vpop.f32.mrb[9].mxu0 }
 0x193   : > { %v1022_v14 = vadd.f32 %v2483_v1, %v1016_v11 }
 0x195   : > { %vm1023_vm11 = vcmp.ge.f32.partialorder %v1022_v14, 0.0  ;;  %v1024_v15 = vmul.f32 0.2, %v1022_v14 }
 0x197   : > { %v1025_v16 = vsel %vm1023_vm11, %v1022_v14, %v1024_v15 }
 0x198   : > { %1026 = vst [vmem:[%s2352_s24] sm:$0xff] %v1025_v16 }
 0x199   : > { %2203 = dma.done.wait [#allocation3 + $0x1], 128 }
 0x19a   : > { %2204 = vsyncadd [#allocation3 + $0x1], 4294967168  ;;  %2016 = vmatprep.subr.mxu0 %v2241_v12  ;;  %2011 = vmatprep.subr.mxu1 %v2241_v12  ;;  %v1183_v17 = vld [vmem:[#allocation2 + $0x8] sm:$0xff]  ;;  %s1923_s21 = sshll.u32 %s2223_s15, 1  ;;  %s1924_s27 = sshll.u32 %s2227_s16, 2 }
 0x19b   : > { %2018 = vmatprep.mubr.msk.f32.mxu0 %vm2242_vm0, %v2241_v12  ;;  %2013 = vmatprep.mubr.msk.f32.mxu1 %vm2242_vm0, %v2241_v12  ;;  %v1029_v18 = vld [vmem:[#allocation2 + $0x8] sm:$0xf]  ;;  %v1185_v19 = vcombine.high %v1183_v17, %v1183_v17  ;;  %s1768_s28 = sadd.s32 %s1924_s27, %s1923_s21  ;;  %s1772_s7 = sshll.u32 %s2352_s24, 4  ;;  %s2574_s7 = int_to_ptr.vmem [resolvable:$true] %s1772_s7 }
 0x19c   : > { %1186 = vrot.lane.b32.xlu1 %v1183_v17, %s2243_s5  ;;  %1033 = vrot.lane.b32.xlu0 %v1183_v17, %s2244_s8  ;;  %s1925_s29 = sshll.u32 %s1768_s28, 7  ;;  %s2641_s15 = sand.u32 1, %s2215_s13  }
 0x19d   : > { %2017 = vmatpush3.msk.msra.mxu0 %vm273_vm1, %v1029_v18  ;;  %s2572_s6 = scalar_lea.hbm %s2631_s3, %s1925_s29  ;;  %s1756_s16 = scalar_lea.sflag [#allocation5], %s2641_s15 }
 0x19e   : > { %2026 = vmatprep.subr.mxu0 %v2241_v12  ;;  %2019 = vmatmul.mubr.msk.f32.vlgmr.msra.gmra.mrb[10].mxu0 %vm269_vm2, %v2360_v2 }
 0x19f   : > { %2028 = vmatprep.mubr.msk.f32.mxu0 %vm2242_vm0, %v2241_v12 }
 0x1a0   : > { %1188 = vrot.lane.b32.xlu1 %v1185_v19, %s2243_s5  ;;  %1267 = vrot.lane.b32.xlu0 %v1183_v17, %s2245_s18  ;;  %s2141_s5 = scalar_lea.vmem %s2574_s7, 256 }
 0x1a1   : > { %p2142_p12 = scmp.ne.s32.totalorder %s2574_s7, %s2141_s5 }
 0x1a3   : > { %p2143_p13 = pnand %p2142_p12, %p2324_p3 }
 0x1a4   : > { %1269 = vrot.lane.b32.xlu1 %v1185_v19, %s2245_s18  ;;  %1035 = vrot.lane.b32.xlu0 %v1185_v19, %s2244_s8  ;;  %s2252_s8 = smov [#allocation4]  }
 0x1a5   : > { %p2144_p0 = pneg %p2143_p13  ;;  %s2145_s18 = sshll.u32 %s2252_s8, 4  ;;  %s2146_s18 = int_to_ptr.vmem [resolvable:$false] %s2145_s18 }
 0x1a6   : > { %p2148_p1 = scmp.lt.s32.totalorder %s2574_s7, %s2146_s18 }
 0x1a8   : > { %1350 = vrot.lane.b32.xlu1 %v1185_v19, %s2246_s22  ;;  %1348 = vrot.lane.b32.xlu0 %v1183_v17, %s2246_s22  ;;  %s2147_s22 = scalar_lea.vmem %s2146_s18, 512 }
 0x1a9   : > { %p2149_p2 = scmp.lt.s32.totalorder %s2147_s22, %s2141_s5 }
 0x1ab   : > { %p2150_p4 = por %p2149_p2, %p2148_p1 }
 0x1ac   : > { %1431 = vrot.lane.b32.xlu1 %v1185_v19, %s2247_s23  ;;  %1429 = vrot.lane.b32.xlu0 %v1183_v17, %s2247_s23 }
 0x1ad   : > { %p2151_p5 = pnand %p2150_p4, %p2144_p0 }
 0x1b0   : > { %1512 = vrot.lane.b32.xlu1 %v1185_v19, %s2249_s4  ;;  %1510 = vrot.lane.b32.xlu0 %v1183_v17, %s2249_s4 }
 0x1b4   : > { %1593 = vrot.lane.b32.xlu1 %v1185_v19, %s2250_s11  ;;  %1591 = vrot.lane.b32.xlu0 %v1183_v17, %s2250_s11 }
 0x1b8   : > { %1674 = vrot.lane.b32.xlu1 %v1185_v19, %s2251_s20  ;;  %1672 = vrot.lane.b32.xlu0 %v1183_v17, %s2251_s20 }
 0x20e   : > { %v1187_v2 = vpop.permute.xlu1 %1186  ;;  %v1034_v20 = vpop.permute.xlu0 %1033 }
 0x212   : > { %v1189_v21 = vpop.permute.xlu1 %1188  ;;  %v1268_v22 = vpop.permute.xlu0 %1267 }
 0x213   : > { %v1190_v27 = vsel %vm429_vm5, %v1187_v2, %v1189_v21 }
 0x216   : > { %v1270_v23 = vpop.permute.xlu1 %1269  ;;  %v1036_v24 = vpop.permute.xlu0 %1035 }
 0x217   : > { %v1271_v25 = vsel %vm514_vm3, %v1268_v22, %v1270_v23  ;;  %v1037_v26 = vsel %vm267_vm4, %v1034_v20, %v1036_v24 }
 0x218   : > { %2012 = vmatpush3.msk.msra.mxu1 %vm273_vm1, %v1037_v26  ;;  %2027 = vmatpush3.msk.msra.mxu0 %vm273_vm1, %v1271_v25 }
 0x219   : > { %2014 = vmatmul.mubr.msk.f32.vlgmr.msra.gmra.mrb[8].mxu1 %vm269_vm2, %v2365_v3  ;;  %2021 = vmatprep.subr.mxu1 %v2241_v12 }
 0x21a   : > { %v1351_v28 = vpop.permute.xlu1 %1350  ;;  %2022 = vmatpush3.msk.msra.mxu1 %vm273_vm1, %v1190_v27  ;;  %v1349_v29 = vpop.permute.xlu0 %1348  ;;  %2023 = vmatprep.mubr.msk.f32.mxu1 %vm2242_vm0, %v2241_v12 }
 0x21b   : > { %v1352_v30 = vsel %vm599_vm6, %v1349_v29, %v1351_v28  ;;  %2031 = vmatprep.subr.mxu1 %v2241_v12  ;;  %2036 = vmatprep.subr.mxu0 %v2241_v12 }
 0x21c   : > { %2029 = vmatmul.mubr.msk.f32.vlgmr.msra.gmra.mrb[12].mxu0 %vm269_vm2, %v2375_v5 }
 0x21d   : > { %2024 = vmatmul.mubr.msk.f32.vlgmr.msra.gmra.mrb[10].mxu1 %vm269_vm2, %v2370_v4  ;;  %2038 = vmatprep.mubr.msk.f32.mxu0 %vm2242_vm0, %v2241_v12 }
 0x21e   : > { %2032 = vmatpush3.msk.msra.mxu1 %vm273_vm1, %v1352_v30  ;;  %v1432_v3 = vpop.permute.xlu1 %1431  ;;  %v1430_v31 = vpop.permute.xlu0 %1429  ;;  %2033 = vmatprep.mubr.msk.f32.mxu1 %vm2242_vm0, %v2241_v12 }
 0x21f   : > { %v1433_v32 = vsel %vm684_vm7, %v1430_v31, %v1432_v3  ;;  %2041 = vmatprep.subr.mxu1 %v2241_v12 }
 0x220   : > { %2037 = vmatpush3.msk.msra.mxu0 %vm273_vm1, %v1433_v32 }
 0x221   : > { %2034 = vmatmul.mubr.msk.f32.vlgmr.msra.gmra.mrb[12].mxu1 %vm269_vm2, %v2380_v6  ;;  %2039 = vmatmul.mubr.msk.f32.vlgmr.msra.gmra.mrb[14].mxu0 %vm269_vm2, %v2385_v7 }
 0x222   : > { %v1513_v4 = vpop.permute.xlu1 %1512  ;;  %v1511_v5 = vpop.permute.xlu0 %1510  ;;  %2046 = vmatprep.subr.mxu0 %v2241_v12  ;;  %2043 = vmatprep.mubr.msk.f32.mxu1 %vm2242_vm0, %v2241_v12 }
 0x223   : > { %v1514_v33 = vsel %vm769_vm8, %v1511_v5, %v1513_v4  ;;  %2048 = vmatprep.mubr.msk.f32.mxu0 %vm2242_vm0, %v2241_v12 }
 0x224   : > { %2042 = vmatpush3.msk.msra.mxu1 %vm273_vm1, %v1514_v33 }
 0x225   : > { %2044 = vmatmul.mubr.msk.f32.vlgmr.msra.gmra.mrb[14].mxu1 %vm269_vm2, %v2390_v8  ;;  %2051 = vmatprep.subr.mxu1 %v2241_v12 }
 0x226   : > { %v1594_v6 = vpop.permute.xlu1 %1593  ;;  %v1592_v7 = vpop.permute.xlu0 %1591  ;;  %2053 = vmatprep.mubr.msk.f32.mxu1 %vm2242_vm0, %v2241_v12 }
 0x227   : > { %v1595_v34 = vsel %vm854_vm9, %v1592_v7, %v1594_v6 }
 0x228   : > { %2047 = vmatpush3.msk.msra.mxu0 %vm273_vm1, %v1595_v34 }
 0x229   : > { %2049 = vmatmul.mubr.msk.f32.vlgmr.msra.gmra.mrb[16].mxu0 %vm269_vm2, %v2395_v9 }
 0x22a   : > { %v1675_v35 = vpop.permute.xlu1 %1674  ;;  %v1673_v36 = vpop.permute.xlu0 %1672 }
 0x22b   : > { %v1676_v37 = vsel %vm939_vm10, %v1673_v36, %v1675_v35 }
 0x22c   : > { %2052 = vmatpush3.msk.msra.mxu1 %vm273_vm1, %v1676_v37 }
 0x22d   : > { %2054 = vmatmul.mubr.msk.f32.vlgmr.msra.gmra.mrb[16].mxu1 %vm269_vm2, %v2400_v10 }
 0x271   : > { %v1179_v8 = vpop.f32.mrb[10].mxu0 }
 0x272   : > { %v2020_v38 = vpop.f32.mrb[11].mxu0 }
 0x2ec   : > { %v1106_v39 = vpop.f32.mrb[8].mxu1 }
 0x2ed   : > { %v1180_v12 = vadd.f32 %v1179_v8, %v1106_v39  ;;  %v2015_v40 = vpop.f32.mrb[9].mxu1 }
 0x2ef   : > { %v1340_v41 = vpop.f32.mrb[12].mxu0 }
 0x2f0   : > { %v1259_v42 = vpop.f32.mrb[10].mxu1  ;;  %v2030_v43 = vpop.f32.mrb[13].mxu0 }
 0x2f1   : > { %v1263_v44 = vadd.f32 %v1259_v42, %v1180_v12  ;;  %v2025_v9 = vpop.f32.mrb[11].mxu1 }
 0x2f3   : > { %v1344_v45 = vadd.f32 %v1340_v41, %v1263_v44 }
 0x2f4   : > { %v1421_v46 = vpop.f32.mrb[12].mxu1  ;;  %v1502_v47 = vpop.f32.mrb[14].mxu0 }
 0x2f5   : > { %v1425_v48 = vadd.f32 %v1421_v46, %v1344_v45  ;;  %v2035_v49 = vpop.f32.mrb[13].mxu1  ;;  %v2040_v50 = vpop.f32.mrb[15].mxu0 }
 0x2f7   : > { %v1506_v10 = vadd.f32 %v1502_v47, %v1425_v48 }
 0x2f8   : > { %v1583_v51 = vpop.f32.mrb[14].mxu1 }
 0x2f9   : > { %v1587_v52 = vadd.f32 %v1583_v51, %v1506_v10  ;;  %v2045_v53 = vpop.f32.mrb[15].mxu1 }
 0x2fc   : > { %v1664_v54 = vpop.f32.mrb[16].mxu0 }
 0x2fd   : > { %v1668_v55 = vadd.f32 %v1664_v54, %v1587_v52  ;;  %v2050_v56 = vpop.f32.mrb[17].mxu0 }
 0x300   : > { %v1745_v57 = vpop.f32.mrb[16].mxu1 }
 0x301   : > { %v1749_v58 = vadd.f32 %v1745_v57, %v1668_v55  ;;  %v2055_v59 = vpop.f32.mrb[17].mxu1 }
 0x303   : > { %v1750_v60 = vadd.f32 %v1749_v58, %v2483_v1 }
 0x305   : > { %vm1751_vm12 = vcmp.ge.f32.partialorder %v1750_v60, 0.0  ;;  %v1752_v61 = vmul.f32 0.2, %v1750_v60 }
 0x307   : > { %v1753_v62 = vsel %vm1751_vm12, %v1750_v60, %v1752_v61 }
 0x308   : > { %1754 = vst [vmem:[%s2352_s24 + $0x8] sm:$0xff] %v1753_v62 }
 0x309   : > { %2154 = shalt.err (!%p2151_p5)
}
 0x30a   : > { %s2155_s24 = scalar_lea.hbm %s2572_s6, 256  ;;  %s2159_s11 = scalar_lea.hbm %s2631_s3, 1024 }
 0x30b   : > { %p2156_p6 = scmp.ne.s32.totalorder %s2572_s6, %s2155_s24  ;;  %p2160_p10 = scmp.lt.u32.totalorder %s2572_s6, %s2631_s3 }
 0x30c   : > { %p2161_p11 = scmp.lt.u32.totalorder %s2159_s11, %s2155_s24  ;;  %p2163_p13 = scmp.lt.u32.totalorder %s2155_s24, %s2572_s6 }
 0x30d   : > { %p2157_p7 = pnand %p2156_p6, %p2324_p3 }
 0x30e   : > { %p2162_p12 = por %p2161_p11, %p2160_p10 }
 0x30f   : > { %p2158_p9 = pneg %p2157_p7 }
 0x310   : > { %p2164_p0 = por %p2163_p13, %p2162_p12 }
 0x312   : > { %p2165_p1 = pnand %p2164_p0, %p2158_p9 }
 0x314   : > { %2168 = shalt.err (!%p2165_p1)
}
 0x315   : > { %2056 = dma.vmem_to_hbm [thread:$0]  (%p2324_p3), %s2574_s7, 256, %s2572_s6, %s1756_s16  }
 0x316 PF: > { %p2062_p2 = scmp.ge.s32.totalorder %s2239_s19, 2  ;;  %s1784_s27 = sand.u32 1, %s2211_s12  }
 0x317   : > { %s1785_s28 = scalar_lea.sflag [#allocation5], %s1784_s27 }
 0x318   : > { %p2059_p4 = pnand %p2062_p2, %p2333_p8 }
 0x31a   : > { %2206 = dma.done.wait (!%p2059_p4), %s1785_s28, 256  }
 0x31b   : > { %2208 = vsyncadd (!%p2059_p4), %s1785_s28, 4294967040  ;;  %s16_s19 = sadd.s32 1, %s2239_s19   ;;  %s2642_s16 = sld [smem:[#allocation11_spill]] }
 0x31c   : > { %p13_p5 = scmp.ge.s32.totalorder %s16_s19, 6   ;;  %s2643_s25 = sld [smem:[#allocation12_spill]] }
 0x31d   : > { %s2644_s18 = sld [smem:[#allocation13_spill]]  ;;  %s2645_s12 = smov %s2215_s13 }
 0x31e   : > { %s2646_s13 = smov %s2219_s14  ;;  %s2647_s14 = smov %s2342_s30 }
 0x31f   : > { %s2648_s15 = smov %s2231_s17  ;;  %15 = sbr.rel (!%p13_p5) target bundleno = 5 (0x5), region = 157 }
 0x322   : > { %s2649_s17 = smov %s2643_s25 }
 0x326   :  { %1790 = vsyncpa [#allocation5], 1 }
 0x327   :  { %1792 = vsyncpa [#allocation5 + $0x1], 1 }
 0x328   :  { %1793 = vsyncmov [#allocation3] }
 0x32b   :  { %s1794_s26 = vpop.sfrf %1793 }
 0x32c   :  { %p1928_p3 = scmp.ne.s32.totalorder %s1794_s26, 0 }
 0x32e   :  { %1798 = shalt.err (%p1928_p3)  }
 0x32f   :  { %1800 = vsyncmov [#allocation3 + $0x1] }
 0x332   :  { %s1801_s29 = vpop.sfrf %1800 }
 0x333   :  { %p1929_p8 = scmp.ne.s32.totalorder %s1801_s29, 0 }
 0x335   :  { %1805 = shalt.err (%p1929_p8)  }

// kernel: tpu_custom_call.1
= control target key start
LH: loop header
LB: loop body
LE: loop exit
PB: predicated region body
PF: predicated region fallthrough
CT: control target
= control target key end

     0   :  { %8 = vsyncpa [#allocation5], 0  ;;  %s2628_s0 = inlined_call_operand.vmem [shape: f32[2,4,640], index: 0, kind: input, shape index: {}]   ;;  %s2629_s1 = inlined_call_operand.vmem [shape: f32[9,8,4], index: 1, kind: input, shape index: {}]   ;;  %s2630_s2 = inlined_call_operand.vmem [shape: f32[8,1], index: 2, kind: input, shape index: {}]   ;;  %s2631_s3 = inlined_call_operand.hbm [shape: f32[2,8,512], index: 3, kind: output, shape index: {}]  }
   0x1   :  { %10 = vsyncpa [#allocation5 + $0x1], 0  ;;  %s2273_s12 = smov 0   ;;  %s2275_s13 = smov 0  }
   0x2   :  { %s2277_s14 = smov 0   ;;  %s2279_s15 = smov 0  }
   0x3   :  { %s2281_s16 = smov 0   ;;  %s2283_s17 = smov 0  }
   0x4   :  { %s2285_s18 = smov 0   ;;  %s2287_s19 = smov 0  }
   0x5 LB: > { %2636 = sst [smem:[#allocation11_spill]] %s2235_s18  ;;  %s1870_s20 = sadd.s32 4294967295, %s2239_s19   ;;  %s2239_s19 = sphi %s2287_s19, %s16_s19   ;;  %s2235_s18 = sphi %s2285_s18, %s2644_s18   ;;  %s2231_s17 = sphi %s2283_s17, %s2649_s17   ;;  %s2227_s16 = sphi %s2281_s16, %s2642_s16   ;;  %s2223_s15 = sphi %s2279_s15, %s2648_s15   ;;  %s2219_s14 = sphi %s2277_s14, %s2647_s14   ;;  %s2215_s13 = sphi %s2275_s13, %s2646_s13   ;;  %s2211_s12 = sphi %s2273_s12, %s2645_s12  }
   0x6   : > { %s1871_s21 = sadd.s32 4294967294, %s2239_s19   ;;  %s25_s22 = sadd.s32 1, %s2231_s17 }
   0x7   : > { %p26_p0 = scmp.ge.s32.totalorder %s25_s22, 2  ;;  %s28_s23 = sadd.s32 1, %s2235_s18 }
   0x8   : > { %p89_p1 = scmp.ne.s32.totalorder %s2219_s14, %s2215_s13  ;;  %p90_p2 = scmp.eq.s32.totalorder %s1870_s20, 3 }
   0x9   : > { %s2651_s22 = smov (%p26_p0, %s25_s22), 0  ;;  %s2653_s23 = smov (!%p26_p0, %s28_s23), %s2235_s18 }
   0xa   : > { %2637 = sst [smem:[#allocation12_spill]] %s2651_s22  ;;  %s75_s24 = ssub.s32 %s2231_s17, %s2651_s22 }
   0xb   : > { %p2324_p3 = por %p90_p2, %p89_p1  ;;  %p30_p4 = scmp.ge.s32.totalorder %s2653_s23, 2 }
   0xc   : > { %p95_p5 = scmp.ne.s32.totalorder %s2215_s13, %s2211_s12  ;;  %p96_p6 = scmp.eq.s32.totalorder %s1871_s21, 3 }
   0xd   : > { %p1873_p7 = scmp.ge.s32.totalorder %s2239_s19, 1  ;;  %s2655_s23 = smov (%p30_p4, %s2653_s23), 0 }
   0xe   : > { %2639 = sst [smem:[#allocation13_spill]] %s2655_s23  ;;  %p2333_p8 = por %p96_p6, %p95_p5 }
   0xf   : > { %p120_p9 = scmp.lt.s32.totalorder %s2239_s19, 5  ;;  %s74_s27 = ssub.s32 %s2235_s18, %s2655_s23 }
  0x10   : > { %s79_s28 = sadd.s32 1, %s2219_s14  ;;  %s76_s29 = sor.u32 %s75_s24, %s74_s27 }
  0x11   : > { %p121_p10 = pnand %p1873_p7, %p120_p9  ;;  %p77_p11 = scmp.eq.s32.totalorder %s76_s29, 0 }
  0x12   : > { %s2635_s4 = sand.u32 (!%p121_p10), 1, %s2215_s13   ;;  %s1875_s5 = sshll.u32 (!%p121_p10), %s2223_s15, 8 }
  0x13   : > { %s2342_s30 = scalar_select %p77_p11, %s2219_s14, %s79_s28  }
  0x14   : > { %124 = sbr.rel (%p121_p10) target bundleno = 790 (0x316), region = 28  ;;  %s1874_s6 = sshll.u32 (!%p121_p10), %s2635_s4, 4 }
  0x15   : > { %s139_s7 = sshra.s32 (!%p121_p10), %s1875_s5, 7  ;;  %s141_s8 = smul.u32 (!%p121_p10), 5, %s2227_s16 }
  0x16   : > { %s2352_s24 = scalar_lea.vmem (!%p121_p10), [#allocation4], %s1874_s6 }
  0x17   : > { %s142_s9 = sadd.s32 (!%p121_p10), %s141_s8, %s139_s7 }
  0x18   : > { %s1876_s10 = sshll.u32 (!%p121_p10), %s142_s9, 2 }
  0x19   : > { %s144_s21 = scalar_lea.vmem (!%p121_p10), %s2628_s0, %s1876_s10 }
  0x1a   : > { %v177_v0 = vld [vmem:[%s144_s21] sm:$0xff] (!%p121_p10) }
  0x1b   : > { %178 = vst [vmem:[#allocation2] sm:$0xff] %v177_v0 }
  0x1c   : > { %186 = vsyncadd [#allocation3], 128  ;;  %s187_s27 = sadd.s32 128, %s1875_s5 }
  0x1d   : > { %s188_s28 = sshra.s32 %s187_s27, 7 }
  0x1e   : > { %s190_s29 = sadd.s32 %s188_s28, %s141_s8 }
  0x1f   : > { %s1877_s23 = sshll.u32 %s190_s29, 2 }
  0x20   : > { %s192_s4 = scalar_lea.vmem %s2628_s0, %s1877_s23 }
  0x21   : > { %v227_v1 = vld [vmem:[%s192_s4] sm:$0xff] }
  0x22   : > { %228 = vst [vmem:[#allocation2 + $0x8] sm:$0xff] %v227_v1 }
  0x23   : > { %236 = vsyncadd [#allocation3 + $0x1], 128  ;;  %v2360_v2 = vld [vmem:[%s2629_s1] sm:$0xff]  ;;  %v2365_v3 = vld [vmem:[%s2629_s1 + $0x8] sm:$0xff] }
  0x24   : > { %v2370_v4 = vld [vmem:[%s2629_s1 + $0x10] sm:$0xff]  ;;  %v2375_v5 = vld [vmem:[%s2629_s1 + $0x18] sm:$0xff]  ;;  %v2380_v6 = vld [vmem:[%s2629_s1 + $0x20] sm:$0xff] }
  0x25   : > { %v2385_v7 = vld [vmem:[%s2629_s1 + $0x28] sm:$0xff]  ;;  %v2390_v8 = vld [vmem:[%s2629_s1 + $0x30] sm:$0xff]  ;;  %v2395_v9 = vld [vmem:[%s2629_s1 + $0x38] sm:$0xff] }
  0x26   : > { %v2400_v10 = vld [vmem:[%s2629_s1 + $0x40] sm:$0xff] }
  0x27   : > { %v254_v11 = vld [vmem:[%s2630_s2] sm:$0xff] }
  0x28   : > { %2201 = dma.done.wait [#allocation3], 128 }
  0x29   : > { %2202 = vsyncadd [#allocation3], 4294967168  ;;  %v2241_v12 = vmov 0.0   ;;  %vm2242_vm0 = vmmov 0   ;;  %vm273_vm1 = vcmask 1043456   ;;  %v422_v13 = vld [vmem:[#allocation2] sm:$0xff] }
  0x2a   : > { %1971 = vmatprep.subr.mxu1 %v2241_v12  ;;  %1966 = vmatprep.subr.mxu0 %v2241_v12  ;;  %v259_v14 = vld [vmem:[#allocation2] sm:$0xf]  ;;  %vm269_vm2 = vcmask 31744   ;;  %s2243_s5 = smov 126   ;;  %v424_v15 = vcombine.high %v422_v13, %v422_v13  ;;  %s2244_s8 = smov 127   ;;  %v2248_v16 = vmov 0  }
  0x2b   : > { %1973 = vmatprep.mubr.msk.f32.mxu1 %vm2242_vm0, %v2241_v12  ;;  %1968 = vmatprep.mubr.msk.f32.mxu0 %vm2242_vm0, %v2241_v12  ;;  %s2245_s18 = smov 110   ;;  %s2246_s22 = smov 109   ;;  %vm514_vm3 = vcmask 900096   ;;  %vm267_vm4 = vcmask 1039360   ;;  %vm429_vm5 = vcmask 1031168   ;;  %vm599_vm6 = vcmask 891904  }
  0x2c   : > { %425 = vrot.lane.b32.xlu1 %v422_v13, %s2243_s5  ;;  %263 = vrot.lane.b32.xlu0 %v422_v13, %s2244_s8  ;;  %s2247_s23 = smov 108   ;;  %s2249_s4 = smov 92   ;;  %vm684_vm7 = vcmask 883712   ;;  %vm769_vm8 = vcmask 752640   ;;  %vm854_vm9 = vcmask 744448   ;;  %vm939_vm10 = vcmask 736256  }
  0x2d   : > { %1972 = vmatpush3.msk.msra.mxu1 %vm273_vm1, %v259_v14  ;;  %2138 = vset.pattern.permute.xlu0 %v2248_v16  ;;  %s2250_s11 = smov 91   ;;  %s2251_s20 = smov 90  }
  0x2e   : > { %1981 = vmatprep.subr.mxu1 %v2241_v12  ;;  %1974 = vmatmul.mubr.msk.f32.vlgmr.msra.gmra.mrb[0].mxu1 %vm269_vm2, %v2360_v2 }
  0x2f   : > { %1983 = vmatprep.mubr.msk.f32.mxu1 %vm2242_vm0, %v2241_v12 }
  0x30   : > { %427 = vrot.lane.b32.xlu1 %v424_v15, %s2243_s5  ;;  %510 = vrot.lane.b32.xlu0 %v422_v13, %s2245_s18 }
  0x34   : > { %512 = vrot.lane.b32.xlu1 %v424_v15, %s2245_s18  ;;  %265 = vrot.lane.b32.xlu0 %v424_v15, %s2244_s8 }
  0x38   : > { %597 = vrot.lane.b32.xlu1 %v424_v15, %s2246_s22  ;;  %595 = vrot.lane.b32.xlu0 %v422_v13, %s2246_s22 }
  0x3c   : > { %682 = vrot.lane.b32.xlu1 %v424_v15, %s2247_s23  ;;  %680 = vrot.lane.b32.xlu0 %v422_v13, %s2247_s23 }
  0x40   : > { %767 = vrot.lane.b32.xlu1 %v424_v15, %s2249_s4  ;;  %765 = vrot.lane.b32.xlu0 %v422_v13, %s2249_s4 }
  0x44   : > { %852 = vrot.lane.b32.xlu1 %v424_v15, %s2250_s11  ;;  %850 = vrot.lane.b32.xlu0 %v422_v13, %s2250_s11 }
  0x48   : > { %937 = vrot.lane.b32.xlu1 %v424_v15, %s2251_s20  ;;  %935 = vrot.lane.b32.xlu0 %v422_v13, %s2251_s20 }
  0x4c   : > { %1019 = vperm.xlu0 %2138, %v254_v11  }
  0x9e   : > { %v426_v17 = vpop.permute.xlu1 %425  ;;  %v264_v18 = vpop.permute.xlu0 %263 }
  0xa2   : > { %v428_v19 = vpop.permute.xlu1 %427  ;;  %v511_v20 = vpop.permute.xlu0 %510 }
  0xa3   : > { %v430_v25 = vsel %vm429_vm5, %v426_v17, %v428_v19 }
  0xa6   : > { %v513_v21 = vpop.permute.xlu1 %512  ;;  %v266_v22 = vpop.permute.xlu0 %265 }
  0xa7   : > { %v515_v23 = vsel %vm514_vm3, %v511_v20, %v513_v21  ;;  %v268_v24 = vsel %vm267_vm4, %v264_v18, %v266_v22 }
  0xa8   : > { %1967 = vmatpush3.msk.msra.mxu0 %vm273_vm1, %v268_v24  ;;  %1982 = vmatpush3.msk.msra.mxu1 %vm273_vm1, %v515_v23 }
  0xa9   : > { %1969 = vmatmul.mubr.msk.f32.vlgmr.msra.gmra.mrb[0].mxu0 %vm269_vm2, %v2365_v3  ;;  %1976 = vmatprep.subr.mxu0 %v2241_v12 }
  0xaa   : > { %v598_v26 = vpop.permute.xlu1 %597  ;;  %1977 = vmatpush3.msk.msra.mxu0 %vm273_vm1, %v430_v25  ;;  %v596_v27 = vpop.permute.xlu0 %595  ;;  %1978 = vmatprep.mubr.msk.f32.mxu0 %vm2242_vm0, %v2241_v12 }
  0xab   : > { %v600_v28 = vsel %vm599_vm6, %v596_v27, %v598_v26  ;;  %1986 = vmatprep.subr.mxu0 %v2241_v12  ;;  %1991 = vmatprep.subr.mxu1 %v2241_v12 }
  0xac   : > { %1984 = vmatmul.mubr.msk.f32.vlgmr.msra.gmra.mrb[2].mxu1 %vm269_vm2, %v2375_v5 }
  0xad   : > { %1979 = vmatmul.mubr.msk.f32.vlgmr.msra.gmra.mrb[2].mxu0 %vm269_vm2, %v2370_v4  ;;  %1993 = vmatprep.mubr.msk.f32.mxu1 %vm2242_vm0, %v2241_v12 }
  0xae   : > { %1987 = vmatpush3.msk.msra.mxu0 %vm273_vm1, %v600_v28  ;;  %v683_v29 = vpop.permute.xlu1 %682  ;;  %v681_v30 = vpop.permute.xlu0 %680  ;;  %1988 = vmatprep.mubr.msk.f32.mxu0 %vm2242_vm0, %v2241_v12 }
  0xaf   : > { %v685_v31 = vsel %vm684_vm7, %v681_v30, %v683_v29  ;;  %1996 = vmatprep.subr.mxu0 %v2241_v12 }
  0xb0   : > { %1992 = vmatpush3.msk.msra.mxu1 %vm273_vm1, %v685_v31 }
  0xb1   : > { %1989 = vmatmul.mubr.msk.f32.vlgmr.msra.gmra.mrb[4].mxu0 %vm269_vm2, %v2380_v6  ;;  %1994 = vmatmul.mubr.msk.f32.vlgmr.msra.gmra.mrb[4].mxu1 %vm269_vm2, %v2385_v7 }
  0xb2   : > { %v768_v32 = vpop.permute.xlu1 %767  ;;  %v766_v33 = vpop.permute.xlu0 %765  ;;  %2001 = vmatprep.subr.mxu1 %v2241_v12  ;;  %1998 = vmatprep.mubr.msk.f32.mxu0 %vm2242_vm0, %v2241_v12 }
  0xb3   : > { %v770_v34 = vsel %vm769_vm8, %v766_v33, %v768_v32  ;;  %2003 = vmatprep.mubr.msk.f32.mxu1 %vm2242_vm0, %v2241_v12 }
  0xb4   : > { %1997 = vmatpush3.msk.msra.mxu0 %vm273_vm1, %v770_v34 }
  0xb5   : > { %1999 = vmatmul.mubr.msk.f32.vlgmr.msra.gmra.mrb[6].mxu0 %vm269_vm2, %v2390_v8  ;;  %2006 = vmatprep.subr.mxu0 %v2241_v12 }
  0xb6   : > { %v853_v35 = vpop.permute.xlu1 %852  ;;  %v851_v36 = vpop.permute.xlu0 %850  ;;  %2008 = vmatprep.mubr.msk.f32.mxu0 %vm2242_vm0, %v2241_v12 }
  0xb7   : > { %v855_v37 = vsel %vm854_vm9, %v851_v36, %v853_v35 }
  0xb8   : > { %2002 = vmatpush3.msk.msra.mxu1 %vm273_vm1, %v855_v37 }
  0xb9   : > { %2004 = vmatmul.mubr.msk.f32.vlgmr.msra.gmra.mrb[6].mxu1 %vm269_vm2, %v2395_v9 }
  0xba   : > { %v938_v38 = vpop.permute.xlu1 %937  ;;  %v936_v39 = vpop.permute.xlu0 %935 }
  0xbb   : > { %v940_v40 = vsel %vm939_vm10, %v936_v39, %v938_v38 }
  0xbc   : > { %2007 = vmatpush3.msk.msra.mxu0 %vm273_vm1, %v940_v40 }
  0xbd   : > { %2009 = vmatmul.mubr.msk.f32.vlgmr.msra.gmra.mrb[8].mxu0 %vm269_vm2, %v2400_v10 }
  0xcb   : > { %v2483_v1 = vpop.permute.xlu0 %1019 }
 0x101   : > { %v418_v41 = vpop.f32.mrb[0].mxu1 }
 0x102   : > { %v1975_v42 = vpop.f32.mrb[1].mxu1 }
 0x17c   : > { %v342_v43 = vpop.f32.mrb[0].mxu0 }
 0x17d   : > { %v419_v44 = vadd.f32 %v418_v41, %v342_v43  ;;  %v1970_v45 = vpop.f32.mrb[1].mxu0 }
 0x17f   : > { %v587_v46 = vpop.f32.mrb[2].mxu1 }
 0x180   : > { %v502_v47 = vpop.f32.mrb[2].mxu0  ;;  %v1985_v48 = vpop.f32.mrb[3].mxu1 }
 0x181   : > { %v506_v49 = vadd.f32 %v502_v47, %v419_v44  ;;  %v1980_v50 = vpop.f32.mrb[3].mxu0 }
 0x183   : > { %v591_v51 = vadd.f32 %v587_v46, %v506_v49 }
 0x184   : > { %v672_v52 = vpop.f32.mrb[4].mxu0  ;;  %v757_v53 = vpop.f32.mrb[4].mxu1 }
 0x185   : > { %v676_v54 = vadd.f32 %v672_v52, %v591_v51  ;;  %v1990_v55 = vpop.f32.mrb[5].mxu0  ;;  %v1995_v56 = vpop.f32.mrb[5].mxu1 }
 0x187   : > { %v761_v57 = vadd.f32 %v757_v53, %v676_v54 }
 0x188   : > { %v842_v58 = vpop.f32.mrb[6].mxu0 }
 0x189   : > { %v846_v59 = vadd.f32 %v842_v58, %v761_v57  ;;  %v2000_v60 = vpop.f32.mrb[7].mxu0 }
 0x18c   : > { %v927_v61 = vpop.f32.mrb[6].mxu1 }
 0x18d   : > { %v931_v62 = vadd.f32 %v927_v61, %v846_v59  ;;  %v2005_v63 = vpop.f32.mrb[7].mxu1 }
 0x190   : > { %v1012_v0 = vpop.f32.mrb[8].mxu0 }
 0x191   : > { %v1016_v11 = vadd.f32 %v1012_v0, %v931_v62  ;;  %v2010_v13 = vpop.f32.mrb[9].mxu0 }
 0x193   : > { %v1022_v14 = vadd.f32 %v2483_v1, %v1016_v11 }
 0x195   : > { %vm1023_vm11 = vcmp.ge.f32.partialorder %v1022_v14, 0.0  ;;  %v1024_v15 = vmul.f32 0.2, %v1022_v14 }
 0x197   : > { %v1025_v16 = vsel %vm1023_vm11, %v1022_v14, %v1024_v15 }
 0x198   : > { %1026 = vst [vmem:[%s2352_s24] sm:$0xff] %v1025_v16 }
 0x199   : > { %2203 = dma.done.wait [#allocation3 + $0x1], 128 }
 0x19a   : > { %2204 = vsyncadd [#allocation3 + $0x1], 4294967168  ;;  %2016 = vmatprep.subr.mxu0 %v2241_v12  ;;  %2011 = vmatprep.subr.mxu1 %v2241_v12  ;;  %v1183_v17 = vld [vmem:[#allocation2 + $0x8] sm:$0xff]  ;;  %s1923_s21 = sshll.u32 %s2223_s15, 1  ;;  %s1924_s27 = sshll.u32 %s2227_s16, 2 }
 0x19b   : > { %2018 = vmatprep.mubr.msk.f32.mxu0 %vm2242_vm0, %v2241_v12  ;;  %2013 = vmatprep.mubr.msk.f32.mxu1 %vm2242_vm0, %v2241_v12  ;;  %v1029_v18 = vld [vmem:[#allocation2 + $0x8] sm:$0xf]  ;;  %v1185_v19 = vcombine.high %v1183_v17, %v1183_v17  ;;  %s1768_s28 = sadd.s32 %s1924_s27, %s1923_s21  ;;  %s1772_s7 = sshll.u32 %s2352_s24, 4  ;;  %s2574_s7 = int_to_ptr.vmem [resolvable:$true] %s1772_s7 }
 0x19c   : > { %1186 = vrot.lane.b32.xlu1 %v1183_v17, %s2243_s5  ;;  %1033 = vrot.lane.b32.xlu0 %v1183_v17, %s2244_s8  ;;  %s1925_s29 = sshll.u32 %s1768_s28, 7  ;;  %s2641_s15 = sand.u32 1, %s2215_s13  }
 0x19d   : > { %2017 = vmatpush3.msk.msra.mxu0 %vm273_vm1, %v1029_v18  ;;  %s2572_s6 = scalar_lea.hbm %s2631_s3, %s1925_s29  ;;  %s1756_s16 = scalar_lea.sflag [#allocation5], %s2641_s15 }
 0x19e   : > { %2026 = vmatprep.subr.mxu0 %v2241_v12  ;;  %2019 = vmatmul.mubr.msk.f32.vlgmr.msra.gmra.mrb[10].mxu0 %vm269_vm2, %v2360_v2 }
 0x19f   : > { %2028 = vmatprep.mubr.msk.f32.mxu0 %vm2242_vm0, %v2241_v12 }
 0x1a0   : > { %1188 = vrot.lane.b32.xlu1 %v1185_v19, %s2243_s5  ;;  %1267 = vrot.lane.b32.xlu0 %v1183_v17, %s2245_s18  ;;  %s2141_s5 = scalar_lea.vmem %s2574_s7, 256 }
 0x1a1   : > { %p2142_p12 = scmp.ne.s32.totalorder %s2574_s7, %s2141_s5 }
 0x1a3   : > { %p2143_p13 = pnand %p2142_p12, %p2324_p3 }
 0x1a4   : > { %1269 = vrot.lane.b32.xlu1 %v1185_v19, %s2245_s18  ;;  %1035 = vrot.lane.b32.xlu0 %v1185_v19, %s2244_s8  ;;  %s2252_s8 = smov [#allocation4]  }
 0x1a5   : > { %p2144_p0 = pneg %p2143_p13  ;;  %s2145_s18 = sshll.u32 %s2252_s8, 4  ;;  %s2146_s18 = int_to_ptr.vmem [resolvable:$false] %s2145_s18 }
 0x1a6   : > { %p2148_p1 = scmp.lt.s32.totalorder %s2574_s7, %s2146_s18 }
 0x1a8   : > { %1350 = vrot.lane.b32.xlu1 %v1185_v19, %s2246_s22  ;;  %1348 = vrot.lane.b32.xlu0 %v1183_v17, %s2246_s22  ;;  %s2147_s22 = scalar_lea.vmem %s2146_s18, 512 }
 0x1a9   : > { %p2149_p2 = scmp.lt.s32.totalorder %s2147_s22, %s2141_s5 }
 0x1ab   : > { %p2150_p4 = por %p2149_p2, %p2148_p1 }
 0x1ac   : > { %1431 = vrot.lane.b32.xlu1 %v1185_v19, %s2247_s23  ;;  %1429 = vrot.lane.b32.xlu0 %v1183_v17, %s2247_s23 }
 0x1ad   : > { %p2151_p5 = pnand %p2150_p4, %p2144_p0 }
 0x1b0   : > { %1512 = vrot.lane.b32.xlu1 %v1185_v19, %s2249_s4  ;;  %1510 = vrot.lane.b32.xlu0 %v1183_v17, %s2249_s4 }
 0x1b4   : > { %1593 = vrot.lane.b32.xlu1 %v1185_v19, %s2250_s11  ;;  %1591 = vrot.lane.b32.xlu0 %v1183_v17, %s2250_s11 }
 0x1b8   : > { %1674 = vrot.lane.b32.xlu1 %v1185_v19, %s2251_s20  ;;  %1672 = vrot.lane.b32.xlu0 %v1183_v17, %s2251_s20 }
 0x20e   : > { %v1187_v2 = vpop.permute.xlu1 %1186  ;;  %v1034_v20 = vpop.permute.xlu0 %1033 }
 0x212   : > { %v1189_v21 = vpop.permute.xlu1 %1188  ;;  %v1268_v22 = vpop.permute.xlu0 %1267 }
 0x213   : > { %v1190_v27 = vsel %vm429_vm5, %v1187_v2, %v1189_v21 }
 0x216   : > { %v1270_v23 = vpop.permute.xlu1 %1269  ;;  %v1036_v24 = vpop.permute.xlu0 %1035 }
 0x217   : > { %v1271_v25 = vsel %vm514_vm3, %v1268_v22, %v1270_v23  ;;  %v1037_v26 = vsel %vm267_vm4, %v1034_v20, %v1036_v24 }
 0x218   : > { %2012 = vmatpush3.msk.msra.mxu1 %vm273_vm1, %v1037_v26  ;;  %2027 = vmatpush3.msk.msra.mxu0 %vm273_vm1, %v1271_v25 }
 0x219   : > { %2014 = vmatmul.mubr.msk.f32.vlgmr.msra.gmra.mrb[8].mxu1 %vm269_vm2, %v2365_v3  ;;  %2021 = vmatprep.subr.mxu1 %v2241_v12 }
 0x21a   : > { %v1351_v28 = vpop.permute.xlu1 %1350  ;;  %2022 = vmatpush3.msk.msra.mxu1 %vm273_vm1, %v1190_v27  ;;  %v1349_v29 = vpop.permute.xlu0 %1348  ;;  %2023 = vmatprep.mubr.msk.f32.mxu1 %vm2242_vm0, %v2241_v12 }
 0x21b   : > { %v1352_v30 = vsel %vm599_vm6, %v1349_v29, %v1351_v28  ;;  %2031 = vmatprep.subr.mxu1 %v2241_v12  ;;  %2036 = vmatprep.subr.mxu0 %v2241_v12 }
 0x21c   : > { %2029 = vmatmul.mubr.msk.f32.vlgmr.msra.gmra.mrb[12].mxu0 %vm269_vm2, %v2375_v5 }
 0x21d   : > { %2024 = vmatmul.mubr.msk.f32.vlgmr.msra.gmra.mrb[10].mxu1 %vm269_vm2, %v2370_v4  ;;  %2038 = vmatprep.mubr.msk.f32.mxu0 %vm2242_vm0, %v2241_v12 }
 0x21e   : > { %2032 = vmatpush3.msk.msra.mxu1 %vm273_vm1, %v1352_v30  ;;  %v1432_v3 = vpop.permute.xlu1 %1431  ;;  %v1430_v31 = vpop.permute.xlu0 %1429  ;;  %2033 = vmatprep.mubr.msk.f32.mxu1 %vm2242_vm0, %v2241_v12 }
 0x21f   : > { %v1433_v32 = vsel %vm684_vm7, %v1430_v31, %v1432_v3  ;;  %2041 = vmatprep.subr.mxu1 %v2241_v12 }
 0x220   : > { %2037 = vmatpush3.msk.msra.mxu0 %vm273_vm1, %v1433_v32 }
 0x221   : > { %2034 = vmatmul.mubr.msk.f32.vlgmr.msra.gmra.mrb[12].mxu1 %vm269_vm2, %v2380_v6  ;;  %2039 = vmatmul.mubr.msk.f32.vlgmr.msra.gmra.mrb[14].mxu0 %vm269_vm2, %v2385_v7 }
 0x222   : > { %v1513_v4 = vpop.permute.xlu1 %1512  ;;  %v1511_v5 = vpop.permute.xlu0 %1510  ;;  %2046 = vmatprep.subr.mxu0 %v2241_v12  ;;  %2043 = vmatprep.mubr.msk.f32.mxu1 %vm2242_vm0, %v2241_v12 }
 0x223   : > { %v1514_v33 = vsel %vm769_vm8, %v1511_v5, %v1513_v4  ;;  %2048 = vmatprep.mubr.msk.f32.mxu0 %vm2242_vm0, %v2241_v12 }
 0x224   : > { %2042 = vmatpush3.msk.msra.mxu1 %vm273_vm1, %v1514_v33 }
 0x225   : > { %2044 = vmatmul.mubr.msk.f32.vlgmr.msra.gmra.mrb[14].mxu1 %vm269_vm2, %v2390_v8  ;;  %2051 = vmatprep.subr.mxu1 %v2241_v12 }
 0x226   : > { %v1594_v6 = vpop.permute.xlu1 %1593  ;;  %v1592_v7 = vpop.permute.xlu0 %1591  ;;  %2053 = vmatprep.mubr.msk.f32.mxu1 %vm2242_vm0, %v2241_v12 }
 0x227   : > { %v1595_v34 = vsel %vm854_vm9, %v1592_v7, %v1594_v6 }
 0x228   : > { %2047 = vmatpush3.msk.msra.mxu0 %vm273_vm1, %v1595_v34 }
 0x229   : > { %2049 = vmatmul.mubr.msk.f32.vlgmr.msra.gmra.mrb[16].mxu0 %vm269_vm2, %v2395_v9 }
 0x22a   : > { %v1675_v35 = vpop.permute.xlu1 %1674  ;;  %v1673_v36 = vpop.permute.xlu0 %1672 }
 0x22b   : > { %v1676_v37 = vsel %vm939_vm10, %v1673_v36, %v1675_v35 }
 0x22c   : > { %2052 = vmatpush3.msk.msra.mxu1 %vm273_vm1, %v1676_v37 }
 0x22d   : > { %2054 = vmatmul.mubr.msk.f32.vlgmr.msra.gmra.mrb[16].mxu1 %vm269_vm2, %v2400_v10 }
 0x271   : > { %v1179_v8 = vpop.f32.mrb[10].mxu0 }
 0x272   : > { %v2020_v38 = vpop.f32.mrb[11].mxu0 }
 0x2ec   : > { %v1106_v39 = vpop.f32.mrb[8].mxu1 }
 0x2ed   : > { %v1180_v12 = vadd.f32 %v1179_v8, %v1106_v39  ;;  %v2015_v40 = vpop.f32.mrb[9].mxu1 }
 0x2ef   : > { %v1340_v41 = vpop.f32.mrb[12].mxu0 }
 0x2f0   : > { %v1259_v42 = vpop.f32.mrb[10].mxu1  ;;  %v2030_v43 = vpop.f32.mrb[13].mxu0 }
 0x2f1   : > { %v1263_v44 = vadd.f32 %v1259_v42, %v1180_v12  ;;  %v2025_v9 = vpop.f32.mrb[11].mxu1 }
 0x2f3   : > { %v1344_v45 = vadd.f32 %v1340_v41, %v1263_v44 }
 0x2f4   : > { %v1421_v46 = vpop.f32.mrb[12].mxu1  ;;  %v1502_v47 = vpop.f32.mrb[14].mxu0 }
 0x2f5   : > { %v1425_v48 = vadd.f32 %v1421_v46, %v1344_v45  ;;  %v2035_v49 = vpop.f32.mrb[13].mxu1  ;;  %v2040_v50 = vpop.f32.mrb[15].mxu0 }
 0x2f7   : > { %v1506_v10 = vadd.f32 %v1502_v47, %v1425_v48 }
 0x2f8   : > { %v1583_v51 = vpop.f32.mrb[14].mxu1 }
 0x2f9   : > { %v1587_v52 = vadd.f32 %v1583_v51, %v1506_v10  ;;  %v2045_v53 = vpop.f32.mrb[15].mxu1 }
 0x2fc   : > { %v1664_v54 = vpop.f32.mrb[16].mxu0 }
 0x2fd   : > { %v1668_v55 = vadd.f32 %v1664_v54, %v1587_v52  ;;  %v2050_v56 = vpop.f32.mrb[17].mxu0 }
 0x300   : > { %v1745_v57 = vpop.f32.mrb[16].mxu1 }
 0x301   : > { %v1749_v58 = vadd.f32 %v1745_v57, %v1668_v55  ;;  %v2055_v59 = vpop.f32.mrb[17].mxu1 }
 0x303   : > { %v1750_v60 = vadd.f32 %v1749_v58, %v2483_v1 }
 0x305   : > { %vm1751_vm12 = vcmp.ge.f32.partialorder %v1750_v60, 0.0  ;;  %v1752_v61 = vmul.f32 0.2, %v1750_v60 }
 0x307   : > { %v1753_v62 = vsel %vm1751_vm12, %v1750_v60, %v1752_v61 }
 0x308   : > { %1754 = vst [vmem:[%s2352_s24 + $0x8] sm:$0xff] %v1753_v62 }
 0x309   : > { %2154 = shalt.err (!%p2151_p5)
}
 0x30a   : > { %s2155_s24 = scalar_lea.hbm %s2572_s6, 256  ;;  %s2159_s11 = scalar_lea.hbm %s2631_s3, 1024 }
 0x30b   : > { %p2156_p6 = scmp.ne.s32.totalorder %s2572_s6, %s2155_s24  ;;  %p2160_p10 = scmp.lt.u32.totalorder %s2572_s6, %s2631_s3 }
 0x30c   : > { %p2161_p11 = scmp.lt.u32.totalorder %s2159_s11, %s2155_s24  ;;  %p2163_p13 = scmp.lt.u32.totalorder %s2155_s24, %s2572_s6 }
 0x30d   : > { %p2157_p7 = pnand %p2156_p6, %p2324_p3 }
 0x30e   : > { %p2162_p12 = por %p2161_p11, %p2160_p10 }
 0x30f   : > { %p2158_p9 = pneg %p2157_p7 }
 0x310   : > { %p2164_p0 = por %p2163_p13, %p2162_p12 }
 0x312   : > { %p2165_p1 = pnand %p2164_p0, %p2158_p9 }
 0x314   : > { %2168 = shalt.err (!%p2165_p1)
}
 0x315   : > { %2056 = dma.vmem_to_hbm [thread:$0]  (%p2324_p3), %s2574_s7, 256, %s2572_s6, %s1756_s16  }
 0x316 PF: > { %p2062_p2 = scmp.ge.s32.totalorder %s2239_s19, 2  ;;  %s1784_s27 = sand.u32 1, %s2211_s12  }
 0x317   : > { %s1785_s28 = scalar_lea.sflag [#allocation5], %s1784_s27 }
 0x318   : > { %p2059_p4 = pnand %p2062_p2, %p2333_p8 }
 0x31a   : > { %2206 = dma.done.wait (!%p2059_p4), %s1785_s28, 256  }
 0x31b   : > { %2208 = vsyncadd (!%p2059_p4), %s1785_s28, 4294967040  ;;  %s16_s19 = sadd.s32 1, %s2239_s19   ;;  %s2642_s16 = sld [smem:[#allocation11_spill]] }
 0x31c   : > { %p13_p5 = scmp.ge.s32.totalorder %s16_s19, 6   ;;  %s2643_s25 = sld [smem:[#allocation12_spill]] }
 0x31d   : > { %s2644_s18 = sld [smem:[#allocation13_spill]]  ;;  %s2645_s12 = smov %s2215_s13 }
 0x31e   : > { %s2646_s13 = smov %s2219_s14  ;;  %s2647_s14 = smov %s2342_s30 }
 0x31f   : > { %s2648_s15 = smov %s2231_s17  ;;  %15 = sbr.rel (!%p13_p5) target bundleno = 5 (0x5), region = 157 }
 0x322   : > { %s2649_s17 = smov %s2643_s25 }
 0x326   :  { %1790 = vsyncpa [#allocation5], 1 }
 0x327   :  { %1792 = vsyncpa [#allocation5 + $0x1], 1 }
 0x328   :  { %1793 = vsyncmov [#allocation3] }
 0x32b   :  { %s1794_s26 = vpop.sfrf %1793 }
 0x32c   :  { %p1928_p3 = scmp.ne.s32.totalorder %s1794_s26, 0 }
 0x32e   :  { %1798 = shalt.err (%p1928_p3)  }
 0x32f   :  { %1800 = vsyncmov [#allocation3 + $0x1] }
 0x332   :  { %s1801_s29 = vpop.sfrf %1800 }
 0x333   :  { %p1929_p8 = scmp.ne.s32.totalorder %s1801_s29, 0 }
 0x335   :  { %1805 = shalt.err (%p1929_p8)  }

</bundles_post_ra>
